<compile_context>
chip_gen: v7x
topology: tpu7x:2x2x1
jax: 0.10.0
libtpu: 0.0.40
codegen_flags: <defaults>
</compile_context>

<pallas_src>
import jax
import jax.numpy as jnp
from jax.experimental import pallas as pl
from jax.experimental.pallas import tpu as pltpu

LANES = 128  # lane-dense output-channel padding


def _round_up(n, m):
    return ((n + m - 1) // m) * m


def _pad_to(a, shape):
    return jnp.pad(a, [(0, t - s) for s, t in zip(a.shape, shape)])


# ----------------------------- Pallas kernel --------------------------------

def make_fused_tcn_kernel(cfgs, B, T, max_pad, kl):
    """Whole-network kernel: all TemporalBlocks + final last-timestep Linear.

    refs layout: (x_ref, *weight_refs, out_ref, act_ref)
      act_ref: (B, TB, 128) f32 VMEM scratch; rows [0:max_pad] are causal zero
      padding (written once), rows [max_pad:max_pad+T] hold the current layer's
      activation with real channels in lanes [0:C] and zeros above.
    """

    def kernel(*refs):
        x_ref = refs[0]
        out_ref = refs[-2]
        act_ref = refs[-1]
        wrefs = refs[1:-2]

        # Zero the buffer once: pad rows + unused lanes stay zero forever.
        act_ref[...] = jnp.zeros_like(act_ref)
        c0 = x_ref.shape[-1]
        x_pad = jnp.concatenate(
            [x_ref[...], jnp.zeros((B, T, LANES - c0), jnp.float32)], axis=-1)
        act_ref[:, pl.ds(max_pad, T), :] = x_pad          # lane-dense store

        def causal_conv(w_ref, b_ref, k, d, c_in):
            """Causal dilated conv1d (Conv1d(pad=(k-1)*d)+Chomp1d) as one
            im2col matmul with contraction width k*c_in (real channels)."""
            buf = act_ref[...]
            taps = [buf[:, max_pad - (k - 1 - j) * d:
                        max_pad - (k - 1 - j) * d + T, :c_in]
                    for j in range(k)]
            slab = jnp.concatenate(taps, axis=-1).reshape(B * T, k * c_in)
            kp = w_ref.shape[0]
            if kp != k * c_in:                            # static; usually no-op
                slab = jnp.concatenate(
                    [slab, jnp.zeros((B * T, kp - k * c_in), slab.dtype)], axis=-1)
            y = jnp.dot(slab.astype(jnp.bfloat16), w_ref[...],
                        preferred_element_type=jnp.float32) + b_ref[...]
            return y.reshape(B, T, LANES)

        idx = 0
        h = None
        for cfg in cfgs:
            k, d = cfg["kernel_size"], cfg["dilation"]
            c_in, c_mid = cfg["c_in"], cfg["c_mid"]
            w1, b1, w2, b2 = (wrefs[idx], wrefs[idx + 1],
                              wrefs[idx + 2], wrefs[idx + 3])
            idx += 4

            buf0 = act_ref[...]                           # block input (value)
            if cfg["has_down"]:
                wd, bd = wrefs[idx], wrefs[idx + 1]
                idx += 2
                kd = cfg["kd"]
                x_res = buf0[:, max_pad:max_pad + T, :kd].reshape(B * T, kd)
                res = (jnp.dot(x_res.astype(jnp.bfloat16), wd[...],
                               preferred_element_type=jnp.float32)
                       + bd[...]).reshape(B, T, LANES)
            else:
                res = buf0[:, max_pad:max_pad + T, :]

            y = jnp.maximum(causal_conv(w1, b1, k, d, c_in), 0.0)   # conv1+relu
            act_ref[:, pl.ds(max_pad, T), :] = y
            y = jnp.maximum(causal_conv(w2, b2, k, d, c_mid), 0.0)  # conv2+relu
            h = jnp.maximum(y + res, 0.0)                           # block relu
            act_ref[:, pl.ds(max_pad, T), :] = h

        # Final Linear on the last timestep (== x[:, :, -1] in torch NCL layout)
        wl_ref, bl_ref = wrefs[idx], wrefs[idx + 1]
        h_last = h[:, T - 1, :kl]                                   # (B, kl)
        out_ref[...] = (jnp.dot(h_last.astype(jnp.bfloat16), wl_ref[...],
                                preferred_element_type=jnp.float32)
                        + bl_ref[...]).astype(out_ref.dtype)

    return kernel


# ----------------------------- Wrappers -------------------------------------

def pack_params_for_kernel(params, lanes=LANES):
    """Pack weights ONCE: flatten conv taps on the contraction axis at real
    channel width (k*C_in), zero-pad only the output-channel axis to 128 lanes,
    and cast matmul weights to bf16 (biases stay f32, added post-accumulate)."""
    flat, cfgs = [], []
    for blk in params["blocks"]:
        k = blk["kernel_size"]
        c_in, c_mid = blk["w1"].shape[1], blk["w1"].shape[2]

        k1 = _round_up(k * c_in, 16)
        w1 = _pad_to(blk["w1"], (k, c_in, lanes)).reshape(k * c_in, lanes)
        flat.append(_pad_to(w1, (k1, lanes)).astype(jnp.bfloat16))
        flat.append(_pad_to(blk["b1"], (1, lanes)).astype(jnp.float32))

        k2 = _round_up(k * c_mid, 16)
        w2 = _pad_to(blk["w2"], (k, c_mid, lanes)).reshape(k * c_mid, lanes)
        flat.append(_pad_to(w2, (k2, lanes)).astype(jnp.bfloat16))
        flat.append(_pad_to(blk["b2"], (1, lanes)).astype(jnp.float32))

        has_down = blk["wd"] is not None
        kd = 0
        if has_down:
            kd = _round_up(c_in, 16)
            flat.append(_pad_to(blk["wd"], (kd, lanes)).astype(jnp.bfloat16))
            flat.append(_pad_to(blk["bd"], (1, lanes)).astype(jnp.float32))

        cfgs.append(dict(kernel_size=k, dilation=blk["dilation"],
                         c_in=c_in, c_mid=c_mid, has_down=has_down, kd=kd))

    wl, bl = params["linear"]
    kl = _round_up(wl.shape[0], 16)
    flat.append(_pad_to(wl, (kl, lanes)).astype(jnp.bfloat16))
    flat.append(_pad_to(bl, (1, lanes)).astype(jnp.float32))
    return dict(flat=flat, cfgs=cfgs, out_size=wl.shape[1], kl=kl, lanes=lanes)


def tcn_forward(packed, x):
    """x: (B, T, input_size) -> (B, output_size). One pallas_call total."""
    B, T, _ = x.shape
    cfgs = packed["cfgs"]
    max_pad = max((c["kernel_size"] - 1) * c["dilation"] for c in cfgs)
    TB = _round_up(max_pad + T, 8)
    args = [x.astype(jnp.float32)] + list(packed["flat"])

    def full_spec(a):
        nd = a.ndim
        return pl.BlockSpec(a.shape, lambda i, _n=nd: (0,) * _n)

    out_pad = pl.pallas_call(
        make_fused_tcn_kernel(cfgs, B, T, max_pad, packed["kl"]),
        out_shape=jax.ShapeDtypeStruct((B, LANES), jnp.float32),
        grid=(1,),
        in_specs=[full_spec(a) for a in args],
        out_specs=pl.BlockSpec((B, LANES), lambda i: (0, 0)),
        scratch_shapes=[pltpu.VMEM((B, TB, LANES), jnp.float32)],
        compiler_params=pltpu.CompilerParams(
            dimension_semantics=("arbitrary",)),
    )(*args)
    return out_pad[:, :packed["out_size"]]


# ----------------------------- Parameters -----------------------------------

def init_tcn_params(key, input_size, output_size, num_channels, kernel_size):
    """Deterministic synthetic parameters matching TCNModel.__init__ shapes.
    Conv1d weights (C_out, C_in, k) are stored pre-transposed as (k, C_in, C_out);
    Linear weight (out, in) is stored as (in, out)."""
    params = {"blocks": [], "linear": None}
    in_c = input_size
    for i, out_c in enumerate(num_channels):
        key, k1, k2, k3, k4, k5, k6 = jax.random.split(key, 7)
        w1 = 0.1 * jax.random.normal(k1, (kernel_size, in_c, out_c), jnp.float32)
        b1 = 0.1 * jax.random.normal(k2, (1, out_c), jnp.float32)
        w2 = 0.1 * jax.random.normal(k3, (kernel_size, out_c, out_c), jnp.float32)
        b2 = 0.1 * jax.random.normal(k4, (1, out_c), jnp.float32)
        if in_c != out_c:
            wd = 0.1 * jax.random.normal(k5, (in_c, out_c), jnp.float32)
            bd = 0.1 * jax.random.normal(k6, (1, out_c), jnp.float32)
        else:
            wd, bd = None, None
        params["blocks"].append(dict(w1=w1, b1=b1, w2=w2, b2=b2, wd=wd, bd=bd,
                                     dilation=2 ** i, kernel_size=kernel_size))
        in_c = out_c
    key, kl1, kl2 = jax.random.split(key, 3)
    wl = 0.1 * jax.random.normal(kl1, (in_c, output_size), jnp.float32)
    bl = 0.1 * jax.random.normal(kl2, (1, output_size), jnp.float32)
    params["linear"] = (wl, bl)
    return params


# ----------------------------- pure-JAX reference ----------------------------

def ref_forward(params, x):
    def conv(inp, w, b, k, d):
        T = inp.shape[1]
        acc = jnp.zeros(inp.shape[:2] + (w.shape[2],), jnp.float32) + b
        for j in range(k):
            s = (k - 1 - j) * d
            sh = inp if s == 0 else jnp.pad(inp, ((0, 0), (s, 0), (0, 0)))[:, :T, :]
            acc = acc + jnp.einsum('btc,cd->btd', sh, w[j])
        return acc

    h = x
    for blk in params["blocks"]:
        k, d = blk["kernel_size"], blk["dilation"]
        y = jnp.maximum(conv(h, blk["w1"], blk["b1"], k, d), 0.0)
        y = jnp.maximum(conv(y, blk["w2"], blk["b2"], k, d), 0.0)
        res = h if blk["wd"] is None else (
            jnp.einsum('btc,cd->btd', h, blk["wd"]) + blk["bd"])
        h = jnp.maximum(y + res, 0.0)
    wl, bl = params["linear"]
    return h[:, -1, :] @ wl + bl


# ----------------------------------- main ------------------------------------

if __name__ == "__main__":
    key = jax.random.PRNGKey(0)
    B, T = 2, 16
    input_size, output_size = 8, 8
    num_channels = [16, 16, 32]   # middle block exercises the no-downsample path
    kernel_size = 2

    kparams, kx = jax.random.split(key)
    params = init_tcn_params(kparams, input_size, output_size,
                             num_channels, kernel_size)
    x = jax.random.normal(kx, (B, T, input_size), jnp.float32)

    packed = pack_params_for_kernel(params)
    out = tcn_forward(packed, x)
    out = jax.block_until_ready(out)
    assert out.shape == (B, output_size)

    ref = ref_forward(params, x)
    # bf16 MXU inputs vs f32 reference -> looser tolerance (per review note).
    if not jnp.allclose(out, ref, atol=5e-2, rtol=5e-2):
        raise AssertionError("Pallas TCN output does not match JAX reference")

    print("KERNEL_OK")
</pallas_src>

<mosaic_0001>
module attributes {stable_mosaic.version = 11 : i64} {
  func.func @kernel(%arg0: i32, %arg1: memref<2x16x8xf32, #tpu.memory_space<vmem>>, %arg2: memref<16x128xbf16, #tpu.memory_space<vmem>>, %arg3: memref<1x128xf32, #tpu.memory_space<vmem>>, %arg4: memref<32x128xbf16, #tpu.memory_space<vmem>>, %arg5: memref<1x128xf32, #tpu.memory_space<vmem>>, %arg6: memref<16x128xbf16, #tpu.memory_space<vmem>>, %arg7: memref<1x128xf32, #tpu.memory_space<vmem>>, %arg8: memref<32x128xbf16, #tpu.memory_space<vmem>>, %arg9: memref<1x128xf32, #tpu.memory_space<vmem>>, %arg10: memref<32x128xbf16, #tpu.memory_space<vmem>>, %arg11: memref<1x128xf32, #tpu.memory_space<vmem>>, %arg12: memref<32x128xbf16, #tpu.memory_space<vmem>>, %arg13: memref<1x128xf32, #tpu.memory_space<vmem>>, %arg14: memref<64x128xbf16, #tpu.memory_space<vmem>>, %arg15: memref<1x128xf32, #tpu.memory_space<vmem>>, %arg16: memref<16x128xbf16, #tpu.memory_space<vmem>>, %arg17: memref<1x128xf32, #tpu.memory_space<vmem>>, %arg18: memref<32x128xbf16, #tpu.memory_space<vmem>>, %arg19: memref<1x128xf32, #tpu.memory_space<vmem>>, %arg20: memref<2x128xf32, #tpu.memory_space<vmem>>, %arg21: memref<2x24x128xf32, #tpu.memory_space<vmem>>) attributes {dimension_semantics = [#tpu.dimension_semantics<arbitrary>], iteration_bounds = array<i64: 1>, scalar_prefetch = 0 : i64, scratch_operands = 1 : i64, tpu.core_type = #tpu.core_type<tc>, window_params = [{pipeline_mode = #tpu.pipeline_mode<synchronous>, transform_indices = @transform_0, window_bounds = array<i64: 2, 16, 8>}, {pipeline_mode = #tpu.pipeline_mode<synchronous>, transform_indices = @transform_1, window_bounds = array<i64: 16, 128>}, {pipeline_mode = #tpu.pipeline_mode<synchronous>, transform_indices = @transform_2, window_bounds = array<i64: 1, 128>}, {pipeline_mode = #tpu.pipeline_mode<synchronous>, transform_indices = @transform_3, window_bounds = array<i64: 32, 128>}, {pipeline_mode = #tpu.pipeline_mode<synchronous>, transform_indices = @transform_4, window_bounds = array<i64: 1, 128>}, {pipeline_mode = #tpu.pipeline_mode<synchronous>, transform_indices = @transform_5, window_bounds = array<i64: 16, 128>}, {pipeline_mode = #tpu.pipeline_mode<synchronous>, transform_indices = @transform_6, window_bounds = array<i64: 1, 128>}, {pipeline_mode = #tpu.pipeline_mode<synchronous>, transform_indices = @transform_7, window_bounds = array<i64: 32, 128>}, {pipeline_mode = #tpu.pipeline_mode<synchronous>, transform_indices = @transform_8, window_bounds = array<i64: 1, 128>}, {pipeline_mode = #tpu.pipeline_mode<synchronous>, transform_indices = @transform_9, window_bounds = array<i64: 32, 128>}, {pipeline_mode = #tpu.pipeline_mode<synchronous>, transform_indices = @transform_10, window_bounds = array<i64: 1, 128>}, {pipeline_mode = #tpu.pipeline_mode<synchronous>, transform_indices = @transform_11, window_bounds = array<i64: 32, 128>}, {pipeline_mode = #tpu.pipeline_mode<synchronous>, transform_indices = @transform_12, window_bounds = array<i64: 1, 128>}, {pipeline_mode = #tpu.pipeline_mode<synchronous>, transform_indices = @transform_13, window_bounds = array<i64: 64, 128>}, {pipeline_mode = #tpu.pipeline_mode<synchronous>, transform_indices = @transform_14, window_bounds = array<i64: 1, 128>}, {pipeline_mode = #tpu.pipeline_mode<synchronous>, transform_indices = @transform_15, window_bounds = array<i64: 16, 128>}, {pipeline_mode = #tpu.pipeline_mode<synchronous>, transform_indices = @transform_16, window_bounds = array<i64: 1, 128>}, {pipeline_mode = #tpu.pipeline_mode<synchronous>, transform_indices = @transform_17, window_bounds = array<i64: 32, 128>}, {pipeline_mode = #tpu.pipeline_mode<synchronous>, transform_indices = @transform_18, window_bounds = array<i64: 1, 128>}, {pipeline_mode = #tpu.pipeline_mode<synchronous>, transform_indices = @transform_19, window_bounds = array<i64: 2, 128>}]} {
    %cst = arith.constant 0.000000e+00 : f32
    %0 = vector.broadcast %cst : f32 to vector<2x24x128xf32>
    %c0 = arith.constant 0 : index
    %c0_0 = arith.constant 0 : index
    %c0_1 = arith.constant 0 : index
    %1 = vector.load %arg21[%c0, %c0_0, %c0_1] : memref<2x24x128xf32, #tpu.memory_space<vmem>>, vector<2x24x128xf32>
    tpu.vector_store %arg21[%c0, %c0_0, %c0_1], %0 {strides = array<i32>} : memref<2x24x128xf32, #tpu.memory_space<vmem>>, vector<2x24x128xf32>,
    %c0_2 = arith.constant 0 : index
    %c0_3 = arith.constant 0 : index
    %c0_4 = arith.constant 0 : index
    %2 = vector.load %arg1[%c0_2, %c0_3, %c0_4] : memref<2x16x8xf32, #tpu.memory_space<vmem>>, vector<2x16x8xf32>
    %cst_5 = arith.constant 0.000000e+00 : f32
    %3 = vector.broadcast %cst_5 : f32 to vector<2x16x120xf32>
    %4 = tpu.concatenate %2, %3 in 2 : vector<2x16x8xf32>, vector<2x16x120xf32> -> vector<2x16x128xf32>
    %c0_6 = arith.constant 0 : index
    %c4 = arith.constant 4 : index
    %c0_7 = arith.constant 0 : index
    %5 = vector.load %arg21[%c0_6, %c4, %c0_7] : memref<2x24x128xf32, #tpu.memory_space<vmem>>, vector<2x16x128xf32>
    tpu.vector_store %arg21[%c0_6, %c4, %c0_7], %4 {strides = array<i32>} : memref<2x24x128xf32, #tpu.memory_space<vmem>>, vector<2x16x128xf32>,
    %c0_8 = arith.constant 0 : index
    %c0_9 = arith.constant 0 : index
    %c0_10 = arith.constant 0 : index
    %6 = vector.load %arg21[%c0_8, %c0_9, %c0_10] : memref<2x24x128xf32, #tpu.memory_space<vmem>>, vector<2x24x128xf32>
    %7 = vector.extract_strided_slice %6 {offsets = [0, 4, 0], sizes = [2, 16, 16], strides = [1, 1, 1]} : vector<2x24x128xf32> to vector<2x16x16xf32>
    %8 = vector.shape_cast %7 : vector<2x16x16xf32> to vector<32x16xf32>
    %9 = arith.truncf %8 : vector<32x16xf32> to vector<32x16xbf16>
    %c0_11 = arith.constant 0 : index
    %c0_12 = arith.constant 0 : index
    %10 = vector.load %arg6[%c0_11, %c0_12] : memref<16x128xbf16, #tpu.memory_space<vmem>>, vector<16x128xbf16>
    %cst_13 = arith.constant dense<0.000000e+00> : vector<32x128xf32>
    %11 = tpu.matmul %9, %10, %cst_13 {dimension_numbers = #tpu.dot_dimension_numbers<[1], [0], [0], [1], [0, 0, 1, 1], [], []>} : vector<32x16xbf16>, vector<16x128xbf16>, vector<32x128xf32> -> vector<32x128xf32>
    %c0_14 = arith.constant 0 : index
    %c0_15 = arith.constant 0 : index
    %12 = vector.load %arg7[%c0_14, %c0_15] : memref<1x128xf32, #tpu.memory_space<vmem>>, vector<1x128xf32>
    %13 = vector.broadcast %12 : vector<1x128xf32> to vector<32x128xf32>
    %14 = arith.addf %11, %13 : vector<32x128xf32>
    %15 = vector.shape_cast %14 : vector<32x128xf32> to vector<2x16x128xf32>
    %c0_16 = arith.constant 0 : index
    %c0_17 = arith.constant 0 : index
    %c0_18 = arith.constant 0 : index
    %16 = vector.load %arg21[%c0_16, %c0_17, %c0_18] : memref<2x24x128xf32, #tpu.memory_space<vmem>>, vector<2x24x128xf32>
    %17 = vector.extract_strided_slice %16 {offsets = [0, 3, 0], sizes = [2, 16, 8], strides = [1, 1, 1]} : vector<2x24x128xf32> to vector<2x16x8xf32>
    %18 = vector.extract_strided_slice %16 {offsets = [0, 4, 0], sizes = [2, 16, 8], strides = [1, 1, 1]} : vector<2x24x128xf32> to vector<2x16x8xf32>
    %19 = tpu.concatenate %17, %18 in 2 : vector<2x16x8xf32>, vector<2x16x8xf32> -> vector<2x16x16xf32>
    %20 = vector.shape_cast %19 : vector<2x16x16xf32> to vector<32x16xf32>
    %21 = arith.truncf %20 : vector<32x16xf32> to vector<32x16xbf16>
    %c0_19 = arith.constant 0 : index
    %c0_20 = arith.constant 0 : index
    %22 = vector.load %arg2[%c0_19, %c0_20] : memref<16x128xbf16, #tpu.memory_space<vmem>>, vector<16x128xbf16>
    %cst_21 = arith.constant dense<0.000000e+00> : vector<32x128xf32>
    %23 = tpu.matmul %21, %22, %cst_21 {dimension_numbers = #tpu.dot_dimension_numbers<[1], [0], [0], [1], [0, 0, 1, 1], [], []>} : vector<32x16xbf16>, vector<16x128xbf16>, vector<32x128xf32> -> vector<32x128xf32>
    %c0_22 = arith.constant 0 : index
    %c0_23 = arith.constant 0 : index
    %24 = vector.load %arg3[%c0_22, %c0_23] : memref<1x128xf32, #tpu.memory_space<vmem>>, vector<1x128xf32>
    %25 = vector.broadcast %24 : vector<1x128xf32> to vector<32x128xf32>
    %26 = arith.addf %23, %25 : vector<32x128xf32>
    %27 = vector.shape_cast %26 : vector<32x128xf32> to vector<2x16x128xf32>
    %cst_24 = arith.constant 0.000000e+00 : f32
    %28 = vector.broadcast %cst_24 : f32 to vector<2x16x128xf32>
    %29 = arith.maximumf %27, %28 : vector<2x16x128xf32>
    %c0_25 = arith.constant 0 : index
    %c4_26 = arith.constant 4 : index
    %c0_27 = arith.constant 0 : index
    %30 = vector.load %arg21[%c0_25, %c4_26, %c0_27] : memref<2x24x128xf32, #tpu.memory_space<vmem>>, vector<2x16x128xf32>
    tpu.vector_store %arg21[%c0_25, %c4_26, %c0_27], %29 {strides = array<i32>} : memref<2x24x128xf32, #tpu.memory_space<vmem>>, vector<2x16x128xf32>,
    %c0_28 = arith.constant 0 : index
    %c0_29 = arith.constant 0 : index
    %c0_30 = arith.constant 0 : index
    %31 = vector.load %arg21[%c0_28, %c0_29, %c0_30] : memref<2x24x128xf32, #tpu.memory_space<vmem>>, vector<2x24x128xf32>
    %32 = vector.extract_strided_slice %31 {offsets = [0, 3, 0], sizes = [2, 16, 16], strides = [1, 1, 1]} : vector<2x24x128xf32> to vector<2x16x16xf32>
    %33 = vector.extract_strided_slice %31 {offsets = [0, 4, 0], sizes = [2, 16, 16], strides = [1, 1, 1]} : vector<2x24x128xf32> to vector<2x16x16xf32>
    %34 = tpu.concatenate %32, %33 in 2 : vector<2x16x16xf32>, vector<2x16x16xf32> -> vector<2x16x32xf32>
    %35 = vector.shape_cast %34 : vector<2x16x32xf32> to vector<32x32xf32>
    %36 = arith.truncf %35 : vector<32x32xf32> to vector<32x32xbf16>
    %c0_31 = arith.constant 0 : index
    %c0_32 = arith.constant 0 : index
    %37 = vector.load %arg4[%c0_31, %c0_32] : memref<32x128xbf16, #tpu.memory_space<vmem>>, vector<32x128xbf16>
    %cst_33 = arith.constant dense<0.000000e+00> : vector<32x128xf32>
    %38 = tpu.matmul %36, %37, %cst_33 {dimension_numbers = #tpu.dot_dimension_numbers<[1], [0], [0], [1], [0, 0, 1, 1], [], []>} : vector<32x32xbf16>, vector<32x128xbf16>, vector<32x128xf32> -> vector<32x128xf32>
    %c0_34 = arith.constant 0 : index
    %c0_35 = arith.constant 0 : index
    %39 = vector.load %arg5[%c0_34, %c0_35] : memref<1x128xf32, #tpu.memory_space<vmem>>, vector<1x128xf32>
    %40 = vector.broadcast %39 : vector<1x128xf32> to vector<32x128xf32>
    %41 = arith.addf %38, %40 : vector<32x128xf32>
    %42 = vector.shape_cast %41 : vector<32x128xf32> to vector<2x16x128xf32>
    %cst_36 = arith.constant 0.000000e+00 : f32
    %43 = vector.broadcast %cst_36 : f32 to vector<2x16x128xf32>
    %44 = arith.maximumf %42, %43 : vector<2x16x128xf32>
    %45 = arith.addf %44, %15 : vector<2x16x128xf32>
    %cst_37 = arith.constant 0.000000e+00 : f32
    %46 = vector.broadcast %cst_37 : f32 to vector<2x16x128xf32>
    %47 = arith.maximumf %45, %46 : vector<2x16x128xf32>
    %c0_38 = arith.constant 0 : index
    %c4_39 = arith.constant 4 : index
    %c0_40 = arith.constant 0 : index
    %48 = vector.load %arg21[%c0_38, %c4_39, %c0_40] : memref<2x24x128xf32, #tpu.memory_space<vmem>>, vector<2x16x128xf32>
    tpu.vector_store %arg21[%c0_38, %c4_39, %c0_40], %47 {strides = array<i32>} : memref<2x24x128xf32, #tpu.memory_space<vmem>>, vector<2x16x128xf32>,
    %c0_41 = arith.constant 0 : index
    %c0_42 = arith.constant 0 : index
    %c0_43 = arith.constant 0 : index
    %49 = vector.load %arg21[%c0_41, %c0_42, %c0_43] : memref<2x24x128xf32, #tpu.memory_space<vmem>>, vector<2x24x128xf32>
    %50 = vector.extract_strided_slice %49 {offsets = [0, 4, 0], sizes = [2, 16, 128], strides = [1, 1, 1]} : vector<2x24x128xf32> to vector<2x16x128xf32>
    %c0_44 = arith.constant 0 : index
    %c0_45 = arith.constant 0 : index
    %c0_46 = arith.constant 0 : index
    %51 = vector.load %arg21[%c0_44, %c0_45, %c0_46] : memref<2x24x128xf32, #tpu.memory_space<vmem>>, vector<2x24x128xf32>
    %52 = vector.extract_strided_slice %51 {offsets = [0, 2, 0], sizes = [2, 16, 16], strides = [1, 1, 1]} : vector<2x24x128xf32> to vector<2x16x16xf32>
    %53 = vector.extract_strided_slice %51 {offsets = [0, 4, 0], sizes = [2, 16, 16], strides = [1, 1, 1]} : vector<2x24x128xf32> to vector<2x16x16xf32>
    %54 = tpu.concatenate %52, %53 in 2 : vector<2x16x16xf32>, vector<2x16x16xf32> -> vector<2x16x32xf32>
    %55 = vector.shape_cast %54 : vector<2x16x32xf32> to vector<32x32xf32>
    %56 = arith.truncf %55 : vector<32x32xf32> to vector<32x32xbf16>
    %c0_47 = arith.constant 0 : index
    %c0_48 = arith.constant 0 : index
    %57 = vector.load %arg8[%c0_47, %c0_48] : memref<32x128xbf16, #tpu.memory_space<vmem>>, vector<32x128xbf16>
    %cst_49 = arith.constant dense<0.000000e+00> : vector<32x128xf32>
    %58 = tpu.matmul %56, %57, %cst_49 {dimension_numbers = #tpu.dot_dimension_numbers<[1], [0], [0], [1], [0, 0, 1, 1], [], []>} : vector<32x32xbf16>, vector<32x128xbf16>, vector<32x128xf32> -> vector<32x128xf32>
    %c0_50 = arith.constant 0 : index
    %c0_51 = arith.constant 0 : index
    %59 = vector.load %arg9[%c0_50, %c0_51] : memref<1x128xf32, #tpu.memory_space<vmem>>, vector<1x128xf32>
    %60 = vector.broadcast %59 : vector<1x128xf32> to vector<32x128xf32>
    %61 = arith.addf %58, %60 : vector<32x128xf32>
    %62 = vector.shape_cast %61 : vector<32x128xf32> to vector<2x16x128xf32>
    %cst_52 = arith.constant 0.000000e+00 : f32
    %63 = vector.broadcast %cst_52 : f32 to vector<2x16x128xf32>
    %64 = arith.maximumf %62, %63 : vector<2x16x128xf32>
    %c0_53 = arith.constant 0 : index
    %c4_54 = arith.constant 4 : index
    %c0_55 = arith.constant 0 : index
    %65 = vector.load %arg21[%c0_53, %c4_54, %c0_55] : memref<2x24x128xf32, #tpu.memory_space<vmem>>, vector<2x16x128xf32>
    tpu.vector_store %arg21[%c0_53, %c4_54, %c0_55], %64 {strides = array<i32>} : memref<2x24x128xf32, #tpu.memory_space<vmem>>, vector<2x16x128xf32>,
    %c0_56 = arith.constant 0 : index
    %c0_57 = arith.constant 0 : index
    %c0_58 = arith.constant 0 : index
    %66 = vector.load %arg21[%c0_56, %c0_57, %c0_58] : memref<2x24x128xf32, #tpu.memory_space<vmem>>, vector<2x24x128xf32>
    %67 = vector.extract_strided_slice %66 {offsets = [0, 2, 0], sizes = [2, 16, 16], strides = [1, 1, 1]} : vector<2x24x128xf32> to vector<2x16x16xf32>
    %68 = vector.extract_strided_slice %66 {offsets = [0, 4, 0], sizes = [2, 16, 16], strides = [1, 1, 1]} : vector<2x24x128xf32> to vector<2x16x16xf32>
    %69 = tpu.concatenate %67, %68 in 2 : vector<2x16x16xf32>, vector<2x16x16xf32> -> vector<2x16x32xf32>
    %70 = vector.shape_cast %69 : vector<2x16x32xf32> to vector<32x32xf32>
    %71 = arith.truncf %70 : vector<32x32xf32> to vector<32x32xbf16>
    %c0_59 = arith.constant 0 : index
    %c0_60 = arith.constant 0 : index
    %72 = vector.load %arg10[%c0_59, %c0_60] : memref<32x128xbf16, #tpu.memory_space<vmem>>, vector<32x128xbf16>
    %cst_61 = arith.constant dense<0.000000e+00> : vector<32x128xf32>
    %73 = tpu.matmul %71, %72, %cst_61 {dimension_numbers = #tpu.dot_dimension_numbers<[1], [0], [0], [1], [0, 0, 1, 1], [], []>} : vector<32x32xbf16>, vector<32x128xbf16>, vector<32x128xf32> -> vector<32x128xf32>
    %c0_62 = arith.constant 0 : index
    %c0_63 = arith.constant 0 : index
    %74 = vector.load %arg11[%c0_62, %c0_63] : memref<1x128xf32, #tpu.memory_space<vmem>>, vector<1x128xf32>
    %75 = vector.broadcast %74 : vector<1x128xf32> to vector<32x128xf32>
    %76 = arith.addf %73, %75 : vector<32x128xf32>
    %77 = vector.shape_cast %76 : vector<32x128xf32> to vector<2x16x128xf32>
    %cst_64 = arith.constant 0.000000e+00 : f32
    %78 = vector.broadcast %cst_64 : f32 to vector<2x16x128xf32>
    %79 = arith.maximumf %77, %78 : vector<2x16x128xf32>
    %80 = arith.addf %79, %50 : vector<2x16x128xf32>
    %cst_65 = arith.constant 0.000000e+00 : f32
    %81 = vector.broadcast %cst_65 : f32 to vector<2x16x128xf32>
    %82 = arith.maximumf %80, %81 : vector<2x16x128xf32>
    %c0_66 = arith.constant 0 : index
    %c4_67 = arith.constant 4 : index
    %c0_68 = arith.constant 0 : index
    %83 = vector.load %arg21[%c0_66, %c4_67, %c0_68] : memref<2x24x128xf32, #tpu.memory_space<vmem>>, vector<2x16x128xf32>
    tpu.vector_store %arg21[%c0_66, %c4_67, %c0_68], %82 {strides = array<i32>} : memref<2x24x128xf32, #tpu.memory_space<vmem>>, vector<2x16x128xf32>,
    %c0_69 = arith.constant 0 : index
    %c0_70 = arith.constant 0 : index
    %c0_71 = arith.constant 0 : index
    %84 = vector.load %arg21[%c0_69, %c0_70, %c0_71] : memref<2x24x128xf32, #tpu.memory_space<vmem>>, vector<2x24x128xf32>
    %85 = vector.extract_strided_slice %84 {offsets = [0, 4, 0], sizes = [2, 16, 16], strides = [1, 1, 1]} : vector<2x24x128xf32> to vector<2x16x16xf32>
    %86 = vector.shape_cast %85 : vector<2x16x16xf32> to vector<32x16xf32>
    %87 = arith.truncf %86 : vector<32x16xf32> to vector<32x16xbf16>
    %c0_72 = arith.constant 0 : index
    %c0_73 = arith.constant 0 : index
    %88 = vector.load %arg16[%c0_72, %c0_73] : memref<16x128xbf16, #tpu.memory_space<vmem>>, vector<16x128xbf16>
    %cst_74 = arith.constant dense<0.000000e+00> : vector<32x128xf32>
    %89 = tpu.matmul %87, %88, %cst_74 {dimension_numbers = #tpu.dot_dimension_numbers<[1], [0], [0], [1], [0, 0, 1, 1], [], []>} : vector<32x16xbf16>, vector<16x128xbf16>, vector<32x128xf32> -> vector<32x128xf32>
    %c0_75 = arith.constant 0 : index
    %c0_76 = arith.constant 0 : index
    %90 = vector.load %arg17[%c0_75, %c0_76] : memref<1x128xf32, #tpu.memory_space<vmem>>, vector<1x128xf32>
    %91 = vector.broadcast %90 : vector<1x128xf32> to vector<32x128xf32>
    %92 = arith.addf %89, %91 : vector<32x128xf32>
    %93 = vector.shape_cast %92 : vector<32x128xf32> to vector<2x16x128xf32>
    %c0_77 = arith.constant 0 : index
    %c0_78 = arith.constant 0 : index
    %c0_79 = arith.constant 0 : index
    %94 = vector.load %arg21[%c0_77, %c0_78, %c0_79] : memref<2x24x128xf32, #tpu.memory_space<vmem>>, vector<2x24x128xf32>
    %95 = vector.extract_strided_slice %94 {offsets = [0, 0, 0], sizes = [2, 16, 16], strides = [1, 1, 1]} : vector<2x24x128xf32> to vector<2x16x16xf32>
    %96 = vector.extract_strided_slice %94 {offsets = [0, 4, 0], sizes = [2, 16, 16], strides = [1, 1, 1]} : vector<2x24x128xf32> to vector<2x16x16xf32>
    %97 = tpu.concatenate %95, %96 in 2 : vector<2x16x16xf32>, vector<2x16x16xf32> -> vector<2x16x32xf32>
    %98 = vector.shape_cast %97 : vector<2x16x32xf32> to vector<32x32xf32>
    %99 = arith.truncf %98 : vector<32x32xf32> to vector<32x32xbf16>
    %c0_80 = arith.constant 0 : index
    %c0_81 = arith.constant 0 : index
    %100 = vector.load %arg12[%c0_80, %c0_81] : memref<32x128xbf16, #tpu.memory_space<vmem>>, vector<32x128xbf16>
    %cst_82 = arith.constant dense<0.000000e+00> : vector<32x128xf32>
    %101 = tpu.matmul %99, %100, %cst_82 {dimension_numbers = #tpu.dot_dimension_numbers<[1], [0], [0], [1], [0, 0, 1, 1], [], []>} : vector<32x32xbf16>, vector<32x128xbf16>, vector<32x128xf32> -> vector<32x128xf32>
    %c0_83 = arith.constant 0 : index
    %c0_84 = arith.constant 0 : index
    %102 = vector.load %arg13[%c0_83, %c0_84] : memref<1x128xf32, #tpu.memory_space<vmem>>, vector<1x128xf32>
    %103 = vector.broadcast %102 : vector<1x128xf32> to vector<32x128xf32>
    %104 = arith.addf %101, %103 : vector<32x128xf32>
    %105 = vector.shape_cast %104 : vector<32x128xf32> to vector<2x16x128xf32>
    %cst_85 = arith.constant 0.000000e+00 : f32
    %106 = vector.broadcast %cst_85 : f32 to vector<2x16x128xf32>
    %107 = arith.maximumf %105, %106 : vector<2x16x128xf32>
    %c0_86 = arith.constant 0 : index
    %c4_87 = arith.constant 4 : index
    %c0_88 = arith.constant 0 : index
    %108 = vector.load %arg21[%c0_86, %c4_87, %c0_88] : memref<2x24x128xf32, #tpu.memory_space<vmem>>, vector<2x16x128xf32>
    tpu.vector_store %arg21[%c0_86, %c4_87, %c0_88], %107 {strides = array<i32>} : memref<2x24x128xf32, #tpu.memory_space<vmem>>, vector<2x16x128xf32>,
    %c0_89 = arith.constant 0 : index
    %c0_90 = arith.constant 0 : index
    %c0_91 = arith.constant 0 : index
    %109 = vector.load %arg21[%c0_89, %c0_90, %c0_91] : memref<2x24x128xf32, #tpu.memory_space<vmem>>, vector<2x24x128xf32>
    %110 = vector.extract_strided_slice %109 {offsets = [0, 0, 0], sizes = [2, 16, 32], strides = [1, 1, 1]} : vector<2x24x128xf32> to vector<2x16x32xf32>
    %111 = vector.extract_strided_slice %109 {offsets = [0, 4, 0], sizes = [2, 16, 32], strides = [1, 1, 1]} : vector<2x24x128xf32> to vector<2x16x32xf32>
    %112 = tpu.concatenate %110, %111 in 2 : vector<2x16x32xf32>, vector<2x16x32xf32> -> vector<2x16x64xf32>
    %113 = vector.shape_cast %112 : vector<2x16x64xf32> to vector<32x64xf32>
    %114 = arith.truncf %113 : vector<32x64xf32> to vector<32x64xbf16>
    %c0_92 = arith.constant 0 : index
    %c0_93 = arith.constant 0 : index
    %115 = vector.load %arg14[%c0_92, %c0_93] : memref<64x128xbf16, #tpu.memory_space<vmem>>, vector<64x128xbf16>
    %cst_94 = arith.constant dense<0.000000e+00> : vector<32x128xf32>
    %116 = tpu.matmul %114, %115, %cst_94 {dimension_numbers = #tpu.dot_dimension_numbers<[1], [0], [0], [1], [0, 0, 1, 1], [], []>} : vector<32x64xbf16>, vector<64x128xbf16>, vector<32x128xf32> -> vector<32x128xf32>
    %c0_95 = arith.constant 0 : index
    %c0_96 = arith.constant 0 : index
    %117 = vector.load %arg15[%c0_95, %c0_96] : memref<1x128xf32, #tpu.memory_space<vmem>>, vector<1x128xf32>
    %118 = vector.broadcast %117 : vector<1x128xf32> to vector<32x128xf32>
    %119 = arith.addf %116, %118 : vector<32x128xf32>
    %120 = vector.shape_cast %119 : vector<32x128xf32> to vector<2x16x128xf32>
    %cst_97 = arith.constant 0.000000e+00 : f32
    %121 = vector.broadcast %cst_97 : f32 to vector<2x16x128xf32>
    %122 = arith.maximumf %120, %121 : vector<2x16x128xf32>
    %123 = arith.addf %122, %93 : vector<2x16x128xf32>
    %cst_98 = arith.constant 0.000000e+00 : f32
    %124 = vector.broadcast %cst_98 : f32 to vector<2x16x128xf32>
    %125 = arith.maximumf %123, %124 : vector<2x16x128xf32>
    %c0_99 = arith.constant 0 : index
    %c4_100 = arith.constant 4 : index
    %c0_101 = arith.constant 0 : index
    %126 = vector.load %arg21[%c0_99, %c4_100, %c0_101] : memref<2x24x128xf32, #tpu.memory_space<vmem>>, vector<2x16x128xf32>
    tpu.vector_store %arg21[%c0_99, %c4_100, %c0_101], %125 {strides = array<i32>} : memref<2x24x128xf32, #tpu.memory_space<vmem>>, vector<2x16x128xf32>,
    %127 = vector.extract_strided_slice %125 {offsets = [0, 15, 0], sizes = [2, 1, 32], strides = [1, 1, 1]} : vector<2x16x128xf32> to vector<2x1x32xf32>
    %128 = vector.shape_cast %127 : vector<2x1x32xf32> to vector<2x32xf32>
    %129 = arith.truncf %128 : vector<2x32xf32> to vector<2x32xbf16>
    %c0_102 = arith.constant 0 : index
    %c0_103 = arith.constant 0 : index
    %130 = vector.load %arg18[%c0_102, %c0_103] : memref<32x128xbf16, #tpu.memory_space<vmem>>, vector<32x128xbf16>
    %cst_104 = arith.constant dense<0.000000e+00> : vector<2x128xf32>
    %131 = tpu.matmul %129, %130, %cst_104 {dimension_numbers = #tpu.dot_dimension_numbers<[1], [0], [0], [1], [0, 0, 1, 1], [], []>} : vector<2x32xbf16>, vector<32x128xbf16>, vector<2x128xf32> -> vector<2x128xf32>
    %c0_105 = arith.constant 0 : index
    %c0_106 = arith.constant 0 : index
    %132 = vector.load %arg19[%c0_105, %c0_106] : memref<1x128xf32, #tpu.memory_space<vmem>>, vector<1x128xf32>
    %133 = vector.broadcast %132 : vector<1x128xf32> to vector<2x128xf32>
    %134 = arith.addf %131, %133 : vector<2x128xf32>
    %c0_107 = arith.constant 0 : index
    %c0_108 = arith.constant 0 : index
    %135 = vector.load %arg20[%c0_107, %c0_108] : memref<2x128xf32, #tpu.memory_space<vmem>>, vector<2x128xf32>
    tpu.vector_store %arg20[%c0_107, %c0_108], %134 {strides = array<i32>} : memref<2x128xf32, #tpu.memory_space<vmem>>, vector<2x128xf32>,
    return
  }
  func.func @transform_0(%arg0: i32) -> (i32, i32, i32) {
    %c0_i32 = arith.constant 0 : i32
    %c0_i32_0 = arith.constant 0 : i32
    %c0_i32_1 = arith.constant 0 : i32
    %c0_i32_2 = arith.constant 0 : i32
    return %c0_i32, %c0_i32_0, %c0_i32_1 : i32, i32, i32
  }
  func.func @transform_1(%arg0: i32) -> (i32, i32) {
    %c0_i32 = arith.constant 0 : i32
    %c0_i32_0 = arith.constant 0 : i32
    %c0_i32_1 = arith.constant 0 : i32
    return %c0_i32, %c0_i32_0 : i32, i32
  }
  func.func @transform_2(%arg0: i32) -> (i32, i32) {
    %c0_i32 = arith.constant 0 : i32
    %c0_i32_0 = arith.constant 0 : i32
    %c0_i32_1 = arith.constant 0 : i32
    return %c0_i32, %c0_i32_0 : i32, i32
  }
  func.func @transform_3(%arg0: i32) -> (i32, i32) {
    %c0_i32 = arith.constant 0 : i32
    %c0_i32_0 = arith.constant 0 : i32
    %c0_i32_1 = arith.constant 0 : i32
    return %c0_i32, %c0_i32_0 : i32, i32
  }
  func.func @transform_4(%arg0: i32) -> (i32, i32) {
    %c0_i32 = arith.constant 0 : i32
    %c0_i32_0 = arith.constant 0 : i32
    %c0_i32_1 = arith.constant 0 : i32
    return %c0_i32, %c0_i32_0 : i32, i32
  }
  func.func @transform_5(%arg0: i32) -> (i32, i32) {
    %c0_i32 = arith.constant 0 : i32
    %c0_i32_0 = arith.constant 0 : i32
    %c0_i32_1 = arith.constant 0 : i32
    return %c0_i32, %c0_i32_0 : i32, i32
  }
  func.func @transform_6(%arg0: i32) -> (i32, i32) {
    %c0_i32 = arith.constant 0 : i32
    %c0_i32_0 = arith.constant 0 : i32
    %c0_i32_1 = arith.constant 0 : i32
    return %c0_i32, %c0_i32_0 : i32, i32
  }
  func.func @transform_7(%arg0: i32) -> (i32, i32) {
    %c0_i32 = arith.constant 0 : i32
    %c0_i32_0 = arith.constant 0 : i32
    %c0_i32_1 = arith.constant 0 : i32
    return %c0_i32, %c0_i32_0 : i32, i32
  }
  func.func @transform_8(%arg0: i32) -> (i32, i32) {
    %c0_i32 = arith.constant 0 : i32
    %c0_i32_0 = arith.constant 0 : i32
    %c0_i32_1 = arith.constant 0 : i32
    return %c0_i32, %c0_i32_0 : i32, i32
  }
  func.func @transform_9(%arg0: i32) -> (i32, i32) {
    %c0_i32 = arith.constant 0 : i32
    %c0_i32_0 = arith.constant 0 : i32
    %c0_i32_1 = arith.constant 0 : i32
    return %c0_i32, %c0_i32_0 : i32, i32
  }
  func.func @transform_10(%arg0: i32) -> (i32, i32) {
    %c0_i32 = arith.constant 0 : i32
    %c0_i32_0 = arith.constant 0 : i32
    %c0_i32_1 = arith.constant 0 : i32
    return %c0_i32, %c0_i32_0 : i32, i32
  }
  func.func @transform_11(%arg0: i32) -> (i32, i32) {
    %c0_i32 = arith.constant 0 : i32
    %c0_i32_0 = arith.constant 0 : i32
    %c0_i32_1 = arith.constant 0 : i32
    return %c0_i32, %c0_i32_0 : i32, i32
  }
  func.func @transform_12(%arg0: i32) -> (i32, i32) {
    %c0_i32 = arith.constant 0 : i32
    %c0_i32_0 = arith.constant 0 : i32
    %c0_i32_1 = arith.constant 0 : i32
    return %c0_i32, %c0_i32_0 : i32, i32
  }
  func.func @transform_13(%arg0: i32) -> (i32, i32) {
    %c0_i32 = arith.constant 0 : i32
    %c0_i32_0 = arith.constant 0 : i32
    %c0_i32_1 = arith.constant 0 : i32
    return %c0_i32, %c0_i32_0 : i32, i32
  }
  func.func @transform_14(%arg0: i32) -> (i32, i32) {
    %c0_i32 = arith.constant 0 : i32
    %c0_i32_0 = arith.constant 0 : i32
    %c0_i32_1 = arith.constant 0 : i32
    return %c0_i32, %c0_i32_0 : i32, i32
  }
  func.func @transform_15(%arg0: i32) -> (i32, i32) {
    %c0_i32 = arith.constant 0 : i32
    %c0_i32_0 = arith.constant 0 : i32
    %c0_i32_1 = arith.constant 0 : i32
    return %c0_i32, %c0_i32_0 : i32, i32
  }
  func.func @transform_16(%arg0: i32) -> (i32, i32) {
    %c0_i32 = arith.constant 0 : i32
    %c0_i32_0 = arith.constant 0 : i32
    %c0_i32_1 = arith.constant 0 : i32
    return %c0_i32, %c0_i32_0 : i32, i32
  }
  func.func @transform_17(%arg0: i32) -> (i32, i32) {
    %c0_i32 = arith.constant 0 : i32
    %c0_i32_0 = arith.constant 0 : i32
    %c0_i32_1 = arith.constant 0 : i32
    return %c0_i32, %c0_i32_0 : i32, i32
  }
  func.func @transform_18(%arg0: i32) -> (i32, i32) {
    %c0_i32 = arith.constant 0 : i32
    %c0_i32_0 = arith.constant 0 : i32
    %c0_i32_1 = arith.constant 0 : i32
    return %c0_i32, %c0_i32_0 : i32, i32
  }
  func.func @transform_19(%arg0: i32) -> (i32, i32) {
    %c0_i32 = arith.constant 0 : i32
    %c0_i32_0 = arith.constant 0 : i32
    %c0_i32_1 = arith.constant 0 : i32
    return %c0_i32, %c0_i32_0 : i32, i32
  }
}

</mosaic_0001>

<bundles_post_ra>
// kernel: tpu_custom_call.1
= control target key start
LH: loop header
LB: loop body
LE: loop exit
PB: predicated region body
PF: predicated region fallthrough
CT: control target
= control target key end

     0   :  { %s2411_s0 = inlined_call_operand.vmem [shape: f32[2,16,8], index: 0, kind: input, shape index: {}]   ;;  %s2412_s1 = inlined_call_operand.hbm [shape: bf16[16,128], index: 1, kind: input, shape index: {}]   ;;  %s2413_s2 = inlined_call_operand.hbm [shape: f32[1,128], index: 2, kind: input, shape index: {}]   ;;  %s2414_s3 = inlined_call_operand.vmem [shape: bf16[32,128], index: 3, kind: input, shape index: {}]   ;;  %s2415_s4 = inlined_call_operand.hbm [shape: f32[1,128], index: 4, kind: input, shape index: {}]   ;;  %s2416_s5 = inlined_call_operand.hbm [shape: bf16[16,128], index: 5, kind: input, shape index: {}]   ;;  %s2417_s6 = inlined_call_operand.hbm [shape: f32[1,128], index: 6, kind: input, shape index: {}]   ;;  %s2418_s7 = inlined_call_operand.vmem [shape: bf16[32,128], index: 7, kind: input, shape index: {}]   ;;  %s2419_s8 = inlined_call_operand.hbm [shape: f32[1,128], index: 8, kind: input, shape index: {}]   ;;  %s2420_s9 = inlined_call_operand.vmem [shape: bf16[32,128], index: 9, kind: input, shape index: {}]   ;;  %s2421_s10 = inlined_call_operand.hbm [shape: f32[1,128], index: 10, kind: input, shape index: {}]   ;;  %s2422_s11 = inlined_call_operand.hbm [shape: bf16[32,128], index: 11, kind: input, shape index: {}]   ;;  %s2423_s12 = inlined_call_operand.hbm [shape: f32[1,128], index: 12, kind: input, shape index: {}]   ;;  %s2424_s13 = inlined_call_operand.vmem [shape: bf16[64,128], index: 13, kind: input, shape index: {}]   ;;  %s2425_s14 = inlined_call_operand.hbm [shape: f32[1,128], index: 14, kind: input, shape index: {}]   ;;  %s2426_s15 = inlined_call_operand.vmem [shape: bf16[16,128], index: 15, kind: input, shape index: {}]   ;;  %s2427_s16 = inlined_call_operand.vmem [shape: f32[1,128], index: 16, kind: input, shape index: {}]   ;;  %s2428_s17 = inlined_call_operand.vmem [shape: bf16[32,128], index: 17, kind: input, shape index: {}]   ;;  %s2429_s18 = inlined_call_operand.vmem [shape: f32[1,128], index: 18, kind: input, shape index: {}]   ;;  %s2430_s19 = inlined_call_operand.hbm [shape: f32[2,128], index: 19, kind: output, shape index: {}]  }
   0x1   :  { %2435 = sst [smem:[#allocation28_spill]] %s2411_s0 }
   0x2   :  { %2436 = sst [smem:[#allocation29_spill]] %s2412_s1 }
   0x3   :  { %2437 = sst [smem:[#allocation30_spill]] %s2413_s2 }
   0x4   :  { %2438 = sst [smem:[#allocation31_spill]] %s2414_s3 }
   0x5   :  { %24 = vsyncpa [#allocation4], 0 }
   0x6   :  { %25 = vsyncpa [#allocation7], 0 }
   0x7   :  { %26 = vsyncpa [#allocation10], 0 }
   0x8   :  { %27 = vsyncpa [#allocation13], 0 }
   0x9   :  { %28 = vsyncpa [#allocation16], 0 }
   0xa   :  { %29 = vsyncpa [#allocation19], 0 }
   0xb   :  { %30 = vsyncpa [#allocation5], 0  ;;  %s1904_s0 = smov [#allocation6]   ;;  %s2439_s1 = sld [smem:[#allocation30_spill]] }
   0xc   :  { %s51_s30 = sshll.u32 %s1904_s0, 4  ;;  %s52_s30 = int_to_ptr.vmem [resolvable:$true] %s51_s30 }
  0x11   :  { %s1648_s22 = scalar_lea.hbm %s2439_s1, 16 }
  0x12   :  { %p1649_p0 = scmp.ne.s32.totalorder %s2439_s1, %s1648_s22  ;;  %p1652_p1 = scmp.lt.u32.totalorder %s1648_s22, %s2439_s1 }
  0x14   :  { %p1654_p2 = pnand %p1652_p1, %p1649_p0 }
  0x16   :  { %1657 = shalt.err (!%p1654_p2)
}
  0x17   :  { %s1658_s3 = scalar_lea.vmem %s52_s30, 16  ;;  %s1662_s26 = scalar_lea.vmem %s52_s30, 32 }
  0x18   :  { %p1659_p3 = scmp.ne.s32.totalorder %s52_s30, %s1658_s3  ;;  %p1663_p4 = scmp.lt.s32.totalorder %s52_s30, %s52_s30 }
  0x19   :  { %p1664_p5 = scmp.lt.s32.totalorder %s1662_s26, %s1658_s3 }
  0x1b   :  { %p1665_p6 = por %p1664_p5, %p1663_p4 }
  0x1d   :  { %p1666_p7 = pnand %p1665_p6, %p1659_p3 }
  0x1f   :  { %1669 = shalt.err (!%p1666_p7)
}
  0x20   :  { %54 = dma.hbm_to_vmem [thread:$0]  %s2439_s1, 16, %s52_s30, [#allocation7]  }
  0x21   :  { %s1905_s29 = smov [#allocation9]   ;;  %s1906_s20 = smov [#allocation12]  }
  0x22   :  { %s72_s0 = sshll.u32 %s1905_s29, 4  ;;  %s97_s21 = sshll.u32 %s1906_s20, 4  ;;  %s73_s0 = int_to_ptr.vmem [resolvable:$true] %s72_s0  ;;  %s98_s21 = int_to_ptr.vmem [resolvable:$true] %s97_s21 }
  0x23   :  { %s1670_s23 = scalar_lea.hbm %s2416_s5, 128 }
  0x24   :  { %p1671_p8 = scmp.ne.s32.totalorder %s2416_s5, %s1670_s23  ;;  %p1674_p9 = scmp.lt.u32.totalorder %s1670_s23, %s2416_s5 }
  0x26   :  { %p1676_p10 = pnand %p1674_p9, %p1671_p8 }
  0x28   :  { %1679 = shalt.err (!%p1676_p10)
}
  0x29   :  { %s1680_s30 = scalar_lea.vmem %s73_s0, 128  ;;  %p1685_p12 = scmp.lt.s32.totalorder %s73_s0, %s73_s0 }
  0x2a   :  { %p1681_p11 = scmp.ne.s32.totalorder %s73_s0, %s1680_s30  ;;  %p1686_p13 = scmp.lt.s32.totalorder %s1680_s30, %s1680_s30 }
  0x2c   :  { %p1687_p0 = por %p1686_p13, %p1685_p12 }
  0x2e   :  { %p1688_p1 = pnand %p1687_p0, %p1681_p11 }
  0x30   :  { %1691 = shalt.err (!%p1688_p1)
}
  0x31   :  { %s1907_s1 = smov 64   ;;  %s1908_s27 = smov 4  }
  0x32   :  { %78 = dma.hbm_to_vmem [thread:$0]  %s2416_s5, 128, %s73_s0, [#allocation10], %s1907_s1, %s1907_s1, %s1908_s27  }
  0x33   :  { %s1692_s2 = scalar_lea.hbm %s2419_s8, 16 }
  0x34   :  { %p1693_p2 = scmp.ne.s32.totalorder %s2419_s8, %s1692_s2  ;;  %p1696_p3 = scmp.lt.u32.totalorder %s1692_s2, %s2419_s8 }
  0x36   :  { %p1698_p4 = pnand %p1696_p3, %p1693_p2 }
  0x38   :  { %1701 = shalt.err (!%p1698_p4)
}
  0x39   :  { %s1702_s26 = scalar_lea.vmem %s98_s21, 16  ;;  %s1706_s30 = scalar_lea.vmem %s98_s21, 32 }
  0x3a   :  { %p1703_p5 = scmp.ne.s32.totalorder %s98_s21, %s1702_s26  ;;  %p1707_p6 = scmp.lt.s32.totalorder %s98_s21, %s98_s21 }
  0x3b   :  { %p1708_p7 = scmp.lt.s32.totalorder %s1706_s30, %s1702_s26 }
  0x3d   :  { %p1709_p8 = por %p1708_p7, %p1707_p6 }
  0x3f   :  { %p1710_p9 = pnand %p1709_p8, %p1703_p5 }
  0x41   :  { %1713 = shalt.err (!%p1710_p9)
}
  0x42   :  { %100 = dma.hbm_to_vmem [thread:$0]  %s2419_s8, 16, %s98_s21, [#allocation13]  }
  0x43   :  { %s1909_s28 = smov [#allocation15]   ;;  %s1910_s20 = smov [#allocation3]  }
  0x44   :  { %s118_s29 = sshll.u32 %s1909_s28, 4  ;;  %s38_s22 = sshll.u32 %s1910_s20, 4  ;;  %s119_s29 = int_to_ptr.vmem [resolvable:$true] %s118_s29  ;;  %s39_s22 = int_to_ptr.vmem [resolvable:$true] %s38_s22 }
  0x45   :  { %s1714_s24 = scalar_lea.hbm %s2422_s11, 256 }
  0x46   :  { %p1715_p10 = scmp.ne.s32.totalorder %s2422_s11, %s1714_s24  ;;  %p1718_p11 = scmp.lt.u32.totalorder %s1714_s24, %s2422_s11 }
  0x48   :  { %p1720_p12 = pnand %p1718_p11, %p1715_p10 }
  0x4a   :  { %1723 = shalt.err (!%p1720_p12)
}
  0x4b   :  { %s1724_s8 = scalar_lea.vmem %s119_s29, 256  ;;  %p1729_p0 = scmp.lt.s32.totalorder %s119_s29, %s119_s29 }
  0x4c   :  { %p1725_p13 = scmp.ne.s32.totalorder %s119_s29, %s1724_s8  ;;  %p1730_p1 = scmp.lt.s32.totalorder %s1724_s8, %s1724_s8 }
  0x4e   :  { %p1731_p2 = por %p1730_p1, %p1729_p0 }
  0x50   :  { %p1732_p3 = pnand %p1731_p2, %p1725_p13 }
  0x52   :  { %1735 = shalt.err (!%p1732_p3)
}
  0x53   :  { %124 = dma.hbm_to_vmem [thread:$0]  %s2422_s11, 256, %s119_s29, [#allocation16], %s1907_s1, %s1907_s1, %s1908_s27  }
  0x54   :  { %s2440_s20 = sld [smem:[#allocation29_spill]] }
  0x5a   :  { %s1736_s2 = scalar_lea.hbm %s2440_s20, 128 }
  0x5b   :  { %p1737_p4 = scmp.ne.s32.totalorder %s2440_s20, %s1736_s2  ;;  %p1740_p5 = scmp.lt.u32.totalorder %s1736_s2, %s2440_s20 }
  0x5d   :  { %p1742_p6 = pnand %p1740_p5, %p1737_p4 }
  0x5f   :  { %1745 = shalt.err (!%p1742_p6)
}
  0x60   :  { %s1746_s26 = scalar_lea.vmem %s39_s22, 128  ;;  %p1751_p8 = scmp.lt.s32.totalorder %s39_s22, %s39_s22 }
  0x61   :  { %p1747_p7 = scmp.ne.s32.totalorder %s39_s22, %s1746_s26  ;;  %p1752_p9 = scmp.lt.s32.totalorder %s1746_s26, %s1746_s26 }
  0x63   :  { %p1753_p10 = por %p1752_p9, %p1751_p8 }
  0x65   :  { %p1754_p11 = pnand %p1753_p10, %p1747_p7 }
  0x67   :  { %1757 = shalt.err (!%p1754_p11)
}
  0x68   :  { %44 = dma.hbm_to_vmem [thread:$0]  %s2440_s20, 128, %s39_s22, [#allocation4], %s1907_s1, %s1907_s1, %s1908_s27  }
  0x69   :  { %s1911_s30 = smov [#allocation8]   ;;  %s1912_s21 = smov [#allocation11]  }
  0x6a   :  { %s63_s8 = sshll.u32 %s1911_s30, 4  ;;  %s85_s5 = sshll.u32 %s1912_s21, 4  ;;  %s64_s8 = int_to_ptr.vmem [resolvable:$true] %s63_s8  ;;  %s86_s5 = int_to_ptr.vmem [resolvable:$true] %s85_s5 }
  0x6b   :  { %s1758_s2 = scalar_lea.hbm %s2415_s4, 16 }
  0x6c   :  { %p1759_p12 = scmp.ne.s32.totalorder %s2415_s4, %s1758_s2  ;;  %p1762_p13 = scmp.lt.u32.totalorder %s1758_s2, %s2415_s4 }
  0x6e   :  { %p1764_p0 = pnand %p1762_p13, %p1759_p12 }
  0x70   :  { %1767 = shalt.err (!%p1764_p0)
}
  0x71   :  { %s1768_s1 = scalar_lea.vmem %s64_s8, 16  ;;  %s1772_s27 = scalar_lea.vmem %s64_s8, 32 }
  0x72   :  { %p1769_p1 = scmp.ne.s32.totalorder %s64_s8, %s1768_s1  ;;  %p1773_p2 = scmp.lt.s32.totalorder %s64_s8, %s64_s8 }
  0x73   :  { %p1774_p3 = scmp.lt.s32.totalorder %s1772_s27, %s1768_s1 }
  0x75   :  { %p1775_p4 = por %p1774_p3, %p1773_p2 }
  0x77   :  { %p1776_p5 = pnand %p1775_p4, %p1769_p1 }
  0x79   :  { %1779 = shalt.err (!%p1776_p5)
}
  0x7a   :  { %66 = dma.hbm_to_vmem [thread:$0]  %s2415_s4, 16, %s64_s8, [#allocation7]  }
  0x7b   :  { %s1780_s29 = scalar_lea.hbm %s2417_s6, 16 }
  0x7c   :  { %p1781_p6 = scmp.ne.s32.totalorder %s2417_s6, %s1780_s29  ;;  %p1784_p7 = scmp.lt.u32.totalorder %s1780_s29, %s2417_s6 }
  0x7e   :  { %p1786_p8 = pnand %p1784_p7, %p1781_p6 }
  0x80   :  { %1789 = shalt.err (!%p1786_p8)
}
  0x81   :  { %s1790_s2 = scalar_lea.vmem %s86_s5, 16  ;;  %s1794_s23 = scalar_lea.vmem %s86_s5, 32 }
  0x82   :  { %p1791_p9 = scmp.ne.s32.totalorder %s86_s5, %s1790_s2  ;;  %p1795_p10 = scmp.lt.s32.totalorder %s86_s5, %s86_s5 }
  0x83   :  { %p1796_p11 = scmp.lt.s32.totalorder %s1794_s23, %s1790_s2 }
  0x85   :  { %p1797_p12 = por %p1796_p11, %p1795_p10 }
  0x87   :  { %p1798_p13 = pnand %p1797_p12, %p1791_p9 }
  0x89   :  { %1801 = shalt.err (!%p1798_p13)
}
  0x8a   :  { %88 = dma.hbm_to_vmem [thread:$0]  %s2417_s6, 16, %s86_s5, [#allocation10]  }
  0x8b   :  { %s1913_s24 = smov [#allocation14]   ;;  %s1914_s3 = smov [#allocation17]  }
  0x8c   :  { %s109_s25 = sshll.u32 %s1913_s24, 4  ;;  %s131_s1 = sshll.u32 %s1914_s3, 4  ;;  %s110_s25 = int_to_ptr.vmem [resolvable:$true] %s109_s25  ;;  %s132_s1 = int_to_ptr.vmem [resolvable:$true] %s131_s1 }
  0x8d   :  { %s1802_s20 = scalar_lea.hbm %s2421_s10, 16 }
  0x8e   :  { %p1803_p0 = scmp.ne.s32.totalorder %s2421_s10, %s1802_s20  ;;  %p1806_p1 = scmp.lt.u32.totalorder %s1802_s20, %s2421_s10 }
  0x90   :  { %p1808_p2 = pnand %p1806_p1, %p1803_p0 }
  0x92   :  { %1811 = shalt.err (!%p1808_p2)
}
  0x93   :  { %s1812_s6 = scalar_lea.vmem %s110_s25, 16  ;;  %s1816_s5 = scalar_lea.vmem %s110_s25, 32 }
  0x94   :  { %p1813_p3 = scmp.ne.s32.totalorder %s110_s25, %s1812_s6  ;;  %p1817_p4 = scmp.lt.s32.totalorder %s110_s25, %s110_s25 }
  0x95   :  { %p1818_p5 = scmp.lt.s32.totalorder %s1816_s5, %s1812_s6 }
  0x97   :  { %p1819_p6 = por %p1818_p5, %p1817_p4 }
  0x99   :  { %p1820_p7 = pnand %p1819_p6, %p1813_p3 }
  0x9b   :  { %1823 = shalt.err (!%p1820_p7)
}
  0x9c   :  { %112 = dma.hbm_to_vmem [thread:$0]  %s2421_s10, 16, %s110_s25, [#allocation13]  }
  0x9d   :  { %s1824_s23 = scalar_lea.hbm %s2423_s12, 16 }
  0x9e   :  { %p1825_p8 = scmp.ne.s32.totalorder %s2423_s12, %s1824_s23  ;;  %p1828_p9 = scmp.lt.u32.totalorder %s1824_s23, %s2423_s12 }
  0xa0   :  { %p1830_p10 = pnand %p1828_p9, %p1825_p8 }
  0xa2   :  { %1833 = shalt.err (!%p1830_p10)
}
  0xa3   :  { %s1834_s27 = scalar_lea.vmem %s132_s1, 16  ;;  %s1838_s22 = scalar_lea.vmem %s132_s1, 32 }
  0xa4   :  { %p1835_p11 = scmp.ne.s32.totalorder %s132_s1, %s1834_s27  ;;  %p1839_p12 = scmp.lt.s32.totalorder %s132_s1, %s132_s1 }
  0xa5   :  { %p1840_p13 = scmp.lt.s32.totalorder %s1838_s22, %s1834_s27 }
  0xa7   :  { %p1841_p0 = por %p1840_p13, %p1839_p12 }
  0xa9   :  { %p1842_p1 = pnand %p1841_p0, %p1835_p11 }
  0xab   :  { %1845 = shalt.err (!%p1842_p1)
}
  0xac   :  { %134 = dma.hbm_to_vmem [thread:$0]  %s2423_s12, 16, %s132_s1, [#allocation16]  }
  0xad   :  { %s1915_s20 = smov [#allocation18]   ;;  %s1846_s30 = scalar_lea.hbm %s2425_s14, 16 }
  0xae   :  { %s143_s26 = sshll.u32 %s1915_s20, 4  ;;  %p1847_p2 = scmp.ne.s32.totalorder %s2425_s14, %s1846_s30  ;;  %s144_s26 = int_to_ptr.vmem [resolvable:$true] %s143_s26 }
  0xaf   :  { %p1850_p3 = scmp.lt.u32.totalorder %s1846_s30, %s2425_s14 }
  0xb1   :  { %p1852_p4 = pnand %p1850_p3, %p1847_p2 }
  0xb3   :  { %1855 = shalt.err (!%p1852_p4)
}
  0xb4   :  { %s1856_s28 = scalar_lea.vmem %s144_s26, 16  ;;  %s1860_s12 = scalar_lea.vmem %s144_s26, 32 }
  0xb5   :  { %p1857_p5 = scmp.ne.s32.totalorder %s144_s26, %s1856_s28  ;;  %p1861_p6 = scmp.lt.s32.totalorder %s144_s26, %s144_s26 }
  0xb6   :  { %p1862_p7 = scmp.lt.s32.totalorder %s1860_s12, %s1856_s28 }
  0xb8   :  { %p1863_p8 = por %p1862_p7, %p1861_p6 }
  0xba   :  { %p1864_p9 = pnand %p1863_p8, %p1857_p5 }
  0xbc   :  { %1867 = shalt.err (!%p1864_p9)
}
  0xbd   :  { %146 = dma.hbm_to_vmem [thread:$0]  %s2425_s14, 16, %s144_s26, [#allocation19]  }
  0xbe   :  { %1890 = dma.done.wait [#allocation4], 128  }
  0xbf   :  { %1891 = vsyncadd [#allocation4], 4294967168 }
  0xc0   :  { %1892 = dma.done.wait [#allocation7], 32  }
  0xc1   :  { %1893 = vsyncadd [#allocation7], 4294967264 }
  0xc2   :  { %1894 = dma.done.wait [#allocation10], 144  }
  0xc3   :  { %1895 = vsyncadd [#allocation10], 4294967152 }
  0xc4   :  { %1896 = dma.done.wait [#allocation13], 32  }
  0xc5   :  { %1897 = vsyncadd [#allocation13], 4294967264 }
  0xc6   :  { %1898 = dma.done.wait [#allocation16], 272  }
  0xc7   :  { %1899 = vsyncadd [#allocation16], 4294967024 }
  0xc8   :  { %1900 = dma.done.wait [#allocation19], 16  }
  0xc9   :  { %1901 = vsyncadd [#allocation19], 4294967280  ;;  %v1916_v0 = vmov 0.0   ;;  %vm196_vm0 = vcmask 64512   ;;  %s2441_s4 = sld [smem:[#allocation28_spill]]  ;;  %vm305_vm1 = vcmask 1046528  }
  0xca   :  { %186 = vst [vmem:[#allocation2] sm:$0xff] %v1916_v0  ;;  %187 = vst [vmem:[#allocation2 + $0x8] sm:$0xff] %v1916_v0  ;;  %v1631_v21 = vld [vmem:[#allocation3] sm:$0xff]   ;;  %s1917_s25 = smov 8   ;;  %vm346_vm2 = vcmask 1044480   ;;  %vm249_vm3 = vcmask 130048  }
  0xcb   :  { %188 = vst [vmem:[#allocation2 + $0x10] sm:$0xff] %v1916_v0  ;;  %189 = vst [vmem:[#allocation2 + $0x18] sm:$0xff] %v1916_v0  ;;  %1469 = vmatprep.subr.bf16.mxu1 %v1631_v21  ;;  %v1632_v56 = vld [vmem:[#allocation9] sm:$0xff]   ;;  %v1390_v57 = vld [vmem:[#allocation6] ss:$0 sm:$0xff]  ;;  %vm217_vm4 = vcmask 1043456  }
  0xcc   :  { %190 = vst [vmem:[#allocation2 + $0x20] sm:$0xff] %v1916_v0  ;;  %191 = vst [vmem:[#allocation2 + $0x28] sm:$0xff] %v1916_v0  ;;  %1470 = vmatpush3.bf16.msra.mxu1 %v1631_v21  ;;  %1463 = vmatprep.subr.bf16.mxu0 %v1632_v56  ;;  %s2442_s11 = sld [smem:[#allocation31_spill]]  ;;  %s1918_s6 = smov 16   ;;  %vm532_vm5 = vcmask 261120   ;;  %vm616_vm6 = vcmask 1045504  }
  0xcd   :  { %1464 = vmatpush3.bf16.msra.mxu0 %v1632_v56  ;;  %vm1216_vm7 = vcmask 523264   ;;  %vm1920_vm8 = vmmov 0   ;;  %vm1307_vm9 = vcmask 1041409   ;;  %s1921_s30 = smov [#allocation20]  }
  0xcf   :  { %v192_v1 = vld [vmem:[%s2441_s4] sm:$0xff]  ;;  %v193_v2 = vld [vmem:[%s2441_s4 + $0x8] sm:$0xff]  ;;  %v194_v3 = vld [vmem:[%s2441_s4 + $0x10] sm:$0xff] }
  0xd0   :  { %v197_v4 = vsel %vm196_vm0, %v192_v1, 0.0  ;;  %v198_v5 = vsel %vm196_vm0, %v193_v2, 0.0  ;;  %v195_v6 = vld [vmem:[%s2441_s4 + $0x18] sm:$0xff]  ;;  %v199_v7 = vsel %vm196_vm0, %v194_v3, 0.0 }
  0xd1   :  { %201 = vst [vmem:[#allocation2 + $0x4] sm:$0xff] %v197_v4  ;;  %202 = vst [vmem:[#allocation2 + $0xc] sm:$0xff] %v198_v5  ;;  %v200_v8 = vsel %vm196_vm0, %v195_v6, 0.0 }
  0xd2   :  { %203 = vst [vmem:[#allocation2 + $0x1c] sm:$0xff] %v199_v7  ;;  %204 = vst [vmem:[#allocation2 + $0x24] sm:$0xff] %v200_v8 }
  0xd8   :  { %v2173_v9 = vld [vmem:[#allocation2] sm:$0xff]  ;;  %v2175_v10 = vld [vmem:[#allocation2 + $0x8] sm:$0xff]  ;;  %v2177_v11 = vld [vmem:[#allocation2 + $0x10] sm:$0xff] }
  0xd9   :  { %v306_v12 = vrot.slane %v2173_v9, 1  ;;  %v307_v13 = vrot.slane %v2175_v10, 1  ;;  %v309_v14 = vrot.slane %v2177_v11, 1  ;;  %v2182_v15 = vld [vmem:[#allocation2 + $0x20] sm:$0xff]  ;;  %v2184_v16 = vld [vmem:[#allocation2 + $0x28] sm:$0xff]  ;;  %v2186_v17 = vld [vmem:[#allocation2 + $0x18] sm:$0xff] }
  0xda   :  { %v312_v18 = vrot.slane %v2182_v15, 1  ;;  %v314_v19 = vrot.slane %v2184_v16, 1  ;;  %v311_v20 = vrot.slane %v2186_v17, 1  ;;  %v218_v3 = vrot.slane %v2173_v9, 4 }
  0xdb   :  { %v308_v22 = vsel %vm305_vm1, %v306_v12, %v307_v13  ;;  %v310_v23 = vsel %vm305_vm1, %v307_v13, %v309_v14  ;;  %v219_v4 = vrot.slane %v2175_v10, 4  ;;  %v221_v7 = vrot.slane %v2177_v11, 4 }
  0xdc   :  { %v1551_v24 = vpack.i.bf16 %v310_v23, %v308_v22  ;;  %v315_v25 = vsel %vm305_vm1, %v312_v18, %v314_v19  ;;  %v313_v26 = vsel %vm305_vm1, %v311_v20, %v312_v18  ;;  %v223_v13 = vrot.slane %v2186_v17, 4 }
  0xdd   :  { %v1561_v27 = vpack.i.bf16 %v314_v19, %v315_v25  ;;  %v1556_v28 = vpack.i.bf16 %v313_v26, %v309_v14  ;;  %v220_v12 = vsel %vm217_vm4, %v218_v3, %v219_v4  ;;  %v224_v14 = vrot.slane %v2182_v15, 4 }
  0xde   :  { %1552 = vrot.lane.b32.xlu0 %v1551_v24, %s1917_s25  ;;  %v222_v19 = vsel %vm217_vm4, %v219_v4, %v221_v7  ;;  %v1634_v24 = vld [vmem:[%s2442_s11 + $0x8] sm:$0xff]  }
  0xdf   :  { %1562 = vrot.lane.b32.xlu1 %v1561_v27, %s1917_s25  ;;  %v225_v20 = vsel %vm217_vm4, %v223_v13, %v224_v14 }
  0xe2   :  { %1557 = vrot.lane.b32.xlu0 %v1556_v28, %s1917_s25 }
 0x150   :  { %v1553_v29 = vpop.permute.xlu0 %1552 }
 0x151   :  { %v1555_v30 = vunpack.i.h.bf16 %v1553_v29  ;;  %v1554_v31 = vunpack.i.l.bf16 %v1553_v29  ;;  %v1563_v32 = vpop.permute.xlu1 %1562 }
 0x152   :  { %v1565_v33 = vunpack.i.h.bf16 %v1563_v32  ;;  %v1564_v34 = vunpack.i.l.bf16 %v1563_v32 }
 0x153   :  { %v335_v35 = vsel %vm196_vm0, %v2175_v10, %v1555_v30  ;;  %v334_v36 = vsel %vm196_vm0, %v2173_v9, %v1554_v31  ;;  %v226_v9 = vrot.slane %v2184_v16, 4  ;;  %v232_v10 = vpack.c.bf16 %v222_v19, %v220_v12  ;;  %v1386_v12 = vld [vmem:[#allocation11] ss:$0 sm:$0xff] }
 0x154   :  { %v339_v37 = vsel %vm196_vm0, %v2184_v16, %v1565_v33  ;;  %v338_v38 = vsel %vm196_vm0, %v2182_v15, %v1564_v34  ;;  %v1558_v39 = vpop.permute.xlu0 %1557  ;;  %v348_v44 = vrot.slane %v335_v35, 3  ;;  %v347_v45 = vrot.slane %v334_v36, 3  ;;  %v1633_v15 = vld [vmem:[%s2442_s11] sm:$0xff]  }
 0x155   :  { %v355_v40 = vrot.slane %v339_v37, 3  ;;  %v353_v41 = vrot.slane %v338_v38, 3  ;;  %v1560_v42 = vunpack.i.h.bf16 %v1558_v39  ;;  %v1559_v43 = vunpack.i.l.bf16 %v1558_v39  ;;  %1465 = vmatprep.mubr.msk.bf16.mxu0 %vm249_vm3, %v232_v10  ;;  %1475 = vmatprep.subr.bf16.mxu0 %v1633_v15 }
 0x156   :  { %v349_v51 = vsel %vm346_vm2, %v347_v45, %v348_v44 }
 0x157   :  { %v337_v46 = vsel %vm196_vm0, %v2186_v17, %v1560_v42  ;;  %v336_v47 = vsel %vm196_vm0, %v2177_v11, %v1559_v43  ;;  %v356_v50 = vsel %vm346_vm2, %v353_v41, %v355_v40  ;;  %v227_v11 = vsel %vm217_vm4, %v224_v14, %v226_v9 }
 0x158   :  { %v352_v48 = vrot.slane %v337_v46, 3  ;;  %v350_v49 = vrot.slane %v336_v47, 3  ;;  %v233_v21 = vpack.c.bf16 %v227_v11, %v225_v20 }
 0x15a   :  { %v351_v52 = vsel %vm346_vm2, %v348_v44, %v350_v49  ;;  %v354_v53 = vsel %vm346_vm2, %v352_v48, %v353_v41  ;;  %1466 = vmatmul.mubr.msk.bf16.vlgmr.msra.gmra.mrb[0].mxu0 %vm249_vm3, %v233_v21 }
 0x15b   :  { %v361_v54 = vpack.c.bf16 %v351_v52, %v349_v51  ;;  %v362_v55 = vpack.c.bf16 %v356_v50, %v354_v53  ;;  %1476 = vmatpush3.bf16.msra.mxu0 %v1633_v15 }
 0x15c   :  { %1477 = vmatprep.subr.bf16.mxu0 %v1634_v24 }
 0x15d   :  { %1471 = vmatprep.mubr.msk.bf16.mxu1 %vm249_vm3, %v361_v54 }
 0x15e   :  { %1472 = vmatmul.mubr.msk.bf16.vlgmr.msra.gmra.mrb[0].mxu1 %vm249_vm3, %v362_v55 }
 0x15f   :  { %1478 = vmatpush3.bf16.msra.mxu0 %v1634_v24 }
 0x22d   :  { %v1467_v4 = vpop.f32.mrb[0].mxu0 }
 0x22e   :  { %v299_v10 = vadd.f32 %v1467_v4, %v1386_v12 }
 0x231   :  { %v1473_v58 = vpop.f32.mrb[0].mxu1 }
 0x232   :  { %v427_v59 = vadd.f32 %v1473_v58, %v1390_v57  ;;  %v418_v60 = vpop.f32.mrb[1].mxu1 }
 0x233   :  { %v419_v61 = vadd.f32 %v1390_v57, %v418_v60  ;;  %v1474_v62 = vpop.f32.mrb[2].mxu1 }
 0x234   :  { %v435_v63 = vmax.f32 %v427_v59, 0.0  ;;  %v430_v1 = vadd.f32 %v1474_v62, %v1390_v57  ;;  %v421_v2 = vpop.f32.mrb[3].mxu1 }
 0x235   :  { %v433_v5 = vmax.f32 %v419_v61, 0.0  ;;  %v422_v6 = vadd.f32 %v1390_v57, %v421_v2 }
 0x236   :  { %439 = vst [vmem:[#allocation2 + $0x1c] sm:$0xff] %v435_v63  ;;  %v436_v8 = vmax.f32 %v430_v1, 0.0 }
 0x237   :  { %437 = vst [vmem:[#allocation2 + $0x4] sm:$0xff] %v433_v5  ;;  %v434_v18 = vmax.f32 %v422_v6, 0.0  ;;  %v290_v5 = vpop.f32.mrb[1].mxu0 }
 0x238   :  { %440 = vst [vmem:[#allocation2 + $0x24] sm:$0xff] %v436_v8  ;;  %v1468_v6 = vpop.f32.mrb[2].mxu0  ;;  %v1394_v8 = vld [vmem:[#allocation8] ss:$0 sm:$0xff]  ;;  %v291_v15 = vadd.f32 %v1386_v12, %v290_v5 }
 0x239   :  { %438 = vst [vmem:[#allocation2 + $0xc] sm:$0xff] %v434_v18  ;;  %v293_v7 = vpop.f32.mrb[3].mxu0 }
 0x23d   :  { %v444_v17 = vld [vmem:[#allocation2 + $0x18] sm:$0xff] }
 0x23e   :  { %v441_v22 = vld [vmem:[#allocation2] sm:$0xff]  ;;  %v458_v26 = vrot.slane %v444_v17, 1 }
 0x23f   :  { %v445_v16 = vld [vmem:[#allocation2 + $0x20] sm:$0xff]  ;;  %v446_v23 = vld [vmem:[#allocation2 + $0x28] sm:$0xff]  ;;  %v453_v30 = vrot.slane %v441_v22, 1 }
 0x240   :  { %v443_v25 = vld [vmem:[#allocation2 + $0x10] sm:$0xff]  ;;  %v459_v27 = vrot.slane %v445_v16, 1  ;;  %v442_v28 = vld [vmem:[#allocation2 + $0x8] sm:$0xff]  ;;  %v461_v32 = vrot.slane %v446_v23, 1 }
 0x241   :  { %v456_v29 = vrot.slane %v443_v25, 1  ;;  %v454_v31 = vrot.slane %v442_v28, 1 }
 0x242   :  { %v460_v33 = vsel %vm305_vm1, %v458_v26, %v459_v27  ;;  %v462_v38 = vsel %vm305_vm1, %v459_v27, %v461_v32 }
 0x243   :  { %v1566_v34 = vpack.i.bf16 %v460_v33, %v456_v29  ;;  %v455_v35 = vsel %vm305_vm1, %v453_v30, %v454_v31  ;;  %v457_v36 = vsel %vm305_vm1, %v454_v31, %v456_v29  ;;  %v1576_v39 = vpack.i.bf16 %v461_v32, %v462_v38 }
 0x244   :  { %v1571_v37 = vpack.i.bf16 %v457_v36, %v455_v35 }
 0x245   :  { %1567 = vrot.lane.b32.xlu0 %v1566_v34, %s1918_s6  ;;  %v1635_v34 = vld [vmem:[%s2418_s7] sm:$0xff]  }
 0x246   :  { %1572 = vrot.lane.b32.xlu1 %v1571_v37, %s1918_s6  ;;  %1483 = vmatprep.subr.bf16.mxu1 %v1635_v34 }
 0x247   :  { %1484 = vmatpush3.bf16.msra.mxu1 %v1635_v34 }
 0x24a   :  { %1577 = vrot.lane.b32.xlu1 %v1576_v39, %s1918_s6  ;;  %v1636_v39 = vld [vmem:[%s2418_s7 + $0x8] sm:$0xff]  }
 0x24b   :  { %1485 = vmatprep.subr.bf16.mxu1 %v1636_v39 }
 0x24c   :  { %1486 = vmatpush3.bf16.msra.mxu1 %v1636_v39 }
 0x2b7   :  { %v1568_v40 = vpop.permute.xlu0 %1567 }
 0x2b8   :  { %v1569_v41 = vunpack.i.l.bf16 %v1568_v40  ;;  %v1573_v42 = vpop.permute.xlu1 %1572  ;;  %v1570_v43 = vunpack.i.h.bf16 %v1568_v40 }
 0x2b9   :  { %v1575_v44 = vunpack.i.h.bf16 %v1573_v42  ;;  %v1574_v45 = vunpack.i.l.bf16 %v1573_v42 }
 0x2ba   :  { %v483_v46 = vsel %vm249_vm3, %v443_v25, %v1569_v41  ;;  %v484_v53 = vsel %vm249_vm3, %v444_v17, %v1570_v43  ;;  %v294_v25 = vadd.f32 %v1386_v12, %v293_v7 }
 0x2bb   :  { %v496_v47 = vrot.slane %v483_v46, 3  ;;  %v482_v48 = vsel %vm249_vm3, %v442_v28, %v1575_v44  ;;  %v481_v49 = vsel %vm249_vm3, %v441_v22, %v1574_v45  ;;  %v498_v61 = vrot.slane %v484_v53, 3 }
 0x2bc   :  { %v494_v50 = vrot.slane %v482_v48, 3  ;;  %v493_v51 = vrot.slane %v481_v49, 3  ;;  %v1578_v52 = vpop.permute.xlu1 %1577 }
 0x2bd   :  { %v1580_v54 = vunpack.i.h.bf16 %v1578_v52  ;;  %v1579_v55 = vunpack.i.l.bf16 %v1578_v52 }
 0x2be   :  { %v495_v56 = vsel %vm346_vm2, %v493_v51, %v494_v50  ;;  %v497_v57 = vsel %vm346_vm2, %v494_v50, %v496_v47 }
 0x2bf   :  { %v486_v58 = vsel %vm249_vm3, %v446_v23, %v1580_v54  ;;  %v485_v59 = vsel %vm249_vm3, %v445_v16, %v1579_v55  ;;  %v507_v60 = vpack.c.bf16 %v497_v57, %v495_v56  ;;  %v302_v16 = vadd.f32 %v1468_v6, %v1386_v12 }
 0x2c0   :  { %v501_v62 = vrot.slane %v486_v58, 3  ;;  %v499_v63 = vrot.slane %v485_v59, 3 }
 0x2c1   :  { %1479 = vmatprep.mubr.msk.bf16.mxu0 %vm532_vm5, %v507_v60 }
 0x2c2   :  { %v500_v1 = vsel %vm346_vm2, %v498_v61, %v499_v63  ;;  %v502_v2 = vsel %vm346_vm2, %v499_v63, %v501_v62 }
 0x2c3   :  { %v508_v3 = vpack.c.bf16 %v502_v2, %v500_v1 }
 0x2c5   :  { %1480 = vmatmul.mubr.msk.bf16.vlgmr.msra.gmra.mrb[4].mxu0 %vm532_vm5, %v508_v3 }
 0x398   :  { %v1481_v13 = vpop.f32.mrb[4].mxu0 }
 0x399   :  { %v582_v14 = vadd.f32 %v1481_v13, %v1394_v8  ;;  %v573_v18 = vpop.f32.mrb[5].mxu0 }
 0x39a   :  { %v574_v19 = vadd.f32 %v1394_v8, %v573_v18  ;;  %v1482_v9 = vpop.f32.mrb[6].mxu0 }
 0x39b   :  { %v590_v20 = vmax.f32 %v582_v14, 0.0  ;;  %v585_v11 = vadd.f32 %v1482_v9, %v1394_v8  ;;  %v576_v21 = vpop.f32.mrb[7].mxu0 }
 0x39c   :  { %v588_v17 = vmax.f32 %v574_v19, 0.0  ;;  %v577_v22 = vadd.f32 %v1394_v8, %v576_v21 }
 0x39d   :  { %v594_v23 = vadd.f32 %v590_v20, %v299_v10  ;;  %v591_v24 = vmax.f32 %v585_v11, 0.0 }
 0x39e   :  { %v592_v26 = vadd.f32 %v588_v17, %v291_v15  ;;  %v589_v27 = vmax.f32 %v577_v22, 0.0  ;;  %v1399_v15 = vld [vmem:[#allocation12] ss:$0 sm:$0xff] }
 0x39f   :  { %v598_v28 = vmax.f32 %v594_v23, 0.0  ;;  %v595_v29 = vadd.f32 %v591_v24, %v302_v16 }
 0x3a0   :  { %v596_v30 = vmax.f32 %v592_v26, 0.0  ;;  %v593_v31 = vadd.f32 %v589_v27, %v294_v25 }
 0x3a1   :  { %602 = vst [vmem:[#allocation2 + $0x1c] sm:$0xff] %v598_v28  ;;  %v599_v32 = vmax.f32 %v595_v29, 0.0 }
 0x3a2   :  { %600 = vst [vmem:[#allocation2 + $0x4] sm:$0xff] %v596_v30  ;;  %v597_v33 = vmax.f32 %v593_v31, 0.0 }
 0x3a3   :  { %603 = vst [vmem:[#allocation2 + $0x24] sm:$0xff] %v599_v32  ;;  %v1637_v32 = vld [vmem:[%s2420_s9] sm:$0xff]  }
 0x3a4   :  { %601 = vst [vmem:[#allocation2 + $0xc] sm:$0xff] %v597_v33  ;;  %1491 = vmatprep.subr.bf16.mxu0 %v1637_v32 }
 0x3a5   :  { %1492 = vmatpush3.bf16.msra.mxu0 %v1637_v32 }
 0x3a8   :  { %v2253_v35 = vld [vmem:[#allocation2 + $0x18] sm:$0xff] }
 0x3a9   :  { %v2255_v36 = vld [vmem:[#allocation2] sm:$0xff]  ;;  %v622_v41 = vrot.slane %v2253_v35, 2 }
 0x3aa   :  { %v2257_v37 = vld [vmem:[#allocation2 + $0x20] sm:$0xff]  ;;  %v2259_v38 = vld [vmem:[#allocation2 + $0x28] sm:$0xff]  ;;  %v617_v45 = vrot.slane %v2255_v36, 2 }
 0x3ab   :  { %v2264_v40 = vld [vmem:[#allocation2 + $0x10] sm:$0xff]  ;;  %v623_v42 = vrot.slane %v2257_v37, 2  ;;  %v2268_v43 = vld [vmem:[#allocation2 + $0x8] sm:$0xff]  ;;  %v625_v47 = vrot.slane %v2259_v38, 2 }
 0x3ac   :  { %v620_v44 = vrot.slane %v2264_v40, 2  ;;  %v618_v46 = vrot.slane %v2268_v43, 2 }
 0x3ad   :  { %v624_v48 = vsel %vm616_vm6, %v622_v41, %v623_v42  ;;  %v626_v53 = vsel %vm616_vm6, %v623_v42, %v625_v47  ;;  %v1638_v42 = vld [vmem:[%s2420_s9 + $0x8] sm:$0xff]  }
 0x3ae   :  { %v1581_v49 = vpack.i.bf16 %v624_v48, %v620_v44  ;;  %v619_v50 = vsel %vm616_vm6, %v617_v45, %v618_v46  ;;  %v621_v51 = vsel %vm616_vm6, %v618_v46, %v620_v44  ;;  %v1591_v54 = vpack.i.bf16 %v625_v47, %v626_v53  ;;  %1493 = vmatprep.subr.bf16.mxu0 %v1638_v42 }
 0x3af   :  { %v1586_v52 = vpack.i.bf16 %v621_v51, %v619_v50  ;;  %1494 = vmatpush3.bf16.msra.mxu0 %v1638_v42 }
 0x3b0   :  { %1582 = vrot.lane.b32.xlu1 %v1581_v49, %s1918_s6 }
 0x3b1   :  { %1587 = vrot.lane.b32.xlu0 %v1586_v52, %s1918_s6 }
 0x3b5   :  { %1592 = vrot.lane.b32.xlu0 %v1591_v54, %s1918_s6 }
 0x422   :  { %v1583_v55 = vpop.permute.xlu1 %1582 }
 0x423   :  { %v1584_v56 = vunpack.i.l.bf16 %v1583_v55  ;;  %v1588_v57 = vpop.permute.xlu0 %1587  ;;  %v1585_v58 = vunpack.i.h.bf16 %v1583_v55 }
 0x424   :  { %v1590_v59 = vunpack.i.h.bf16 %v1588_v57  ;;  %v1589_v60 = vunpack.i.l.bf16 %v1588_v57 }
 0x425   :  { %v647_v61 = vsel %vm249_vm3, %v2264_v40, %v1584_v56  ;;  %v648_v5 = vsel %vm249_vm3, %v2253_v35, %v1585_v58 }
 0x426   :  { %v660_v62 = vrot.slane %v647_v61, 2  ;;  %v646_v63 = vsel %vm249_vm3, %v2268_v43, %v1590_v59  ;;  %v645_v1 = vsel %vm249_vm3, %v2255_v36, %v1589_v60  ;;  %v662_v19 = vrot.slane %v648_v5, 2 }
 0x427   :  { %v658_v2 = vrot.slane %v646_v63, 2  ;;  %v657_v3 = vrot.slane %v645_v1, 2  ;;  %v1593_v4 = vpop.permute.xlu0 %1592 }
 0x428   :  { %v1595_v6 = vunpack.i.h.bf16 %v1593_v4  ;;  %v1594_v7 = vunpack.i.l.bf16 %v1593_v4 }
 0x429   :  { %v659_v8 = vsel %vm616_vm6, %v657_v3, %v658_v2  ;;  %v661_v12 = vsel %vm616_vm6, %v658_v2, %v660_v62 }
 0x42a   :  { %v650_v13 = vsel %vm249_vm3, %v2259_v38, %v1595_v6  ;;  %v649_v14 = vsel %vm249_vm3, %v2257_v37, %v1594_v7  ;;  %v671_v18 = vpack.c.bf16 %v661_v12, %v659_v8 }
 0x42b   :  { %v665_v9 = vrot.slane %v650_v13, 2  ;;  %v663_v10 = vrot.slane %v649_v14, 2 }
 0x42c   :  { %1487 = vmatprep.mubr.msk.bf16.mxu1 %vm532_vm5, %v671_v18 }
 0x42d   :  { %v664_v20 = vsel %vm616_vm6, %v662_v19, %v663_v10  ;;  %v666_v11 = vsel %vm616_vm6, %v663_v10, %v665_v9 }
 0x42e   :  { %v672_v21 = vpack.c.bf16 %v666_v11, %v664_v20 }
 0x430   :  { %1488 = vmatmul.mubr.msk.bf16.vlgmr.msra.gmra.mrb[4].mxu1 %vm532_vm5, %v672_v21 }
 0x503   :  { %v1489_v17 = vpop.f32.mrb[4].mxu1 }
 0x504   :  { %v745_v22 = vadd.f32 %v1489_v17, %v1399_v15  ;;  %v736_v16 = vpop.f32.mrb[5].mxu1 }
 0x505   :  { %v737_v23 = vadd.f32 %v1399_v15, %v736_v16  ;;  %v1490_v24 = vpop.f32.mrb[6].mxu1 }
 0x506   :  { %v753_v25 = vmax.f32 %v745_v22, 0.0  ;;  %v748_v26 = vadd.f32 %v1490_v24, %v1399_v15  ;;  %v739_v27 = vpop.f32.mrb[7].mxu1  ;;  %v1640_v24 = vld [vmem:[#allocation15] sm:$0xff]  }
 0x507   :  { %v751_v28 = vmax.f32 %v737_v23, 0.0  ;;  %v740_v29 = vadd.f32 %v1399_v15, %v739_v27  ;;  %v1639_v23 = vld [vmem:[%s2426_s15] sm:$0xff]   ;;  %1505 = vmatprep.subr.bf16.mxu0 %v1640_v24  ;;  %v915_v27 = vrot.slane %v2257_v37, 4 }
 0x508   :  { %757 = vst [vmem:[#allocation2 + $0x1c] sm:$0xff] %v753_v25  ;;  %v754_v30 = vmax.f32 %v748_v26, 0.0  ;;  %1499 = vmatprep.subr.bf16.mxu1 %v1639_v23  ;;  %v1404_v25 = vld [vmem:[#allocation14] ss:$0 sm:$0xff] }
 0x509   :  { %755 = vst [vmem:[#allocation2 + $0x4] sm:$0xff] %v751_v28  ;;  %v752_v31 = vmax.f32 %v740_v29, 0.0  ;;  %1500 = vmatpush3.bf16.msra.mxu1 %v1639_v23 }
 0x50a   :  { %758 = vst [vmem:[#allocation2 + $0x24] sm:$0xff] %v754_v30  ;;  %v910_v30 = vrot.slane %v2268_v43, 4 }
 0x50b   :  { %756 = vst [vmem:[#allocation2 + $0xc] sm:$0xff] %v752_v31  ;;  %v914_v31 = vrot.slane %v2253_v35, 4 }
 0x50f   :  { %v762_v33 = vld [vmem:[#allocation2 + $0x18] sm:$0xff] }
 0x510   :  { %v759_v34 = vld [vmem:[#allocation2] sm:$0xff]  ;;  %v776_v45 = vrot.slane %v762_v33, 2 }
 0x511   :  { %v763_v39 = vld [vmem:[#allocation2 + $0x20] sm:$0xff]  ;;  %v764_v41 = vld [vmem:[#allocation2 + $0x28] sm:$0xff]  ;;  %v771_v49 = vrot.slane %v759_v34, 2 }
 0x512   :  { %v761_v44 = vld [vmem:[#allocation2 + $0x10] sm:$0xff]  ;;  %v777_v46 = vrot.slane %v763_v39, 2  ;;  %v760_v47 = vld [vmem:[#allocation2 + $0x8] sm:$0xff]  ;;  %v779_v51 = vrot.slane %v764_v41, 2 }
 0x513   :  { %v774_v48 = vrot.slane %v761_v44, 2  ;;  %v772_v50 = vrot.slane %v760_v47, 2 }
 0x514   :  { %v778_v52 = vsel %vm616_vm6, %v776_v45, %v777_v46  ;;  %v780_v57 = vsel %vm616_vm6, %v777_v46, %v779_v51  ;;  %v912_v45 = vrot.slane %v2264_v40, 4  ;;  %v916_v46 = vsel %vm217_vm4, %v914_v31, %v915_v27  ;;  %v1643_v31 = vld [vmem:[%s2424_s13 + $0x8] sm:$0xff]  }
 0x515   :  { %v1596_v53 = vpack.i.bf16 %v778_v52, %v774_v48  ;;  %v773_v54 = vsel %vm616_vm6, %v771_v49, %v772_v50  ;;  %v775_v55 = vsel %vm616_vm6, %v772_v50, %v774_v48  ;;  %v1606_v58 = vpack.i.bf16 %v779_v51, %v780_v57 }
 0x516   :  { %v1601_v56 = vpack.i.bf16 %v775_v55, %v773_v54 }
 0x517   :  { %1597 = vrot.lane.b32.xlu0 %v1596_v53, %s1918_s6 }
 0x518   :  { %1602 = vrot.lane.b32.xlu1 %v1601_v56, %s1918_s6  ;;  %v1641_v56 = vld [vmem:[#allocation15 + $0x8] sm:$0xff]  }
 0x51c   :  { %1607 = vrot.lane.b32.xlu1 %v1606_v58, %s1918_s6 }
 0x589   :  { %v1598_v59 = vpop.permute.xlu0 %1597 }
 0x58a   :  { %v1599_v60 = vunpack.i.l.bf16 %v1598_v59  ;;  %v1603_v61 = vpop.permute.xlu1 %1602  ;;  %v1600_v62 = vunpack.i.h.bf16 %v1598_v59 }
 0x58b   :  { %v1605_v63 = vunpack.i.h.bf16 %v1603_v61  ;;  %v1604_v1 = vunpack.i.l.bf16 %v1603_v61 }
 0x58c   :  { %v801_v2 = vsel %vm249_vm3, %v761_v44, %v1599_v60  ;;  %v802_v12 = vsel %vm249_vm3, %v762_v33, %v1600_v62 }
 0x58d   :  { %v814_v3 = vrot.slane %v801_v2, 2  ;;  %v800_v4 = vsel %vm249_vm3, %v760_v47, %v1605_v63  ;;  %v799_v5 = vsel %vm249_vm3, %v759_v34, %v1604_v1  ;;  %v816_v11 = vrot.slane %v802_v12, 2 }
 0x58e   :  { %v812_v6 = vrot.slane %v800_v4, 2  ;;  %v811_v7 = vrot.slane %v799_v5, 2  ;;  %v1608_v8 = vpop.permute.xlu1 %1607  ;;  %v917_v34 = vrot.slane %v2259_v38, 4 }
 0x58f   :  { %v1610_v13 = vunpack.i.h.bf16 %v1608_v8  ;;  %v1609_v14 = vunpack.i.l.bf16 %v1608_v8 }
 0x590   :  { %v813_v18 = vsel %vm616_vm6, %v811_v7, %v812_v6  ;;  %v815_v19 = vsel %vm616_vm6, %v812_v6, %v814_v3  ;;  %v918_v50 = vsel %vm217_vm4, %v915_v27, %v917_v34 }
 0x591   :  { %v804_v9 = vsel %vm249_vm3, %v764_v41, %v1610_v13  ;;  %v803_v10 = vsel %vm249_vm3, %v763_v39, %v1609_v14  ;;  %v825_v20 = vpack.c.bf16 %v815_v19, %v813_v18  ;;  %v909_v41 = vrot.slane %v2255_v36, 4 }
 0x592   :  { %v819_v21 = vrot.slane %v804_v9, 2  ;;  %v817_v15 = vrot.slane %v803_v10, 2  ;;  %v913_v36 = vsel %vm217_vm4, %v910_v30, %v912_v45 }
 0x593   :  { %1495 = vmatprep.mubr.msk.bf16.mxu0 %vm532_vm5, %v825_v20  ;;  %v911_v43 = vsel %vm217_vm4, %v909_v41, %v910_v30  ;;  %v1642_v30 = vld [vmem:[%s2424_s13] sm:$0xff]  }
 0x594   :  { %v818_v17 = vsel %vm616_vm6, %v816_v11, %v817_v15  ;;  %v820_v22 = vsel %vm616_vm6, %v817_v15, %v819_v21  ;;  %1513 = vmatprep.subr.bf16.mxu1 %v1642_v30 }
 0x595   :  { %v826_v16 = vpack.c.bf16 %v820_v22, %v818_v17 }
 0x597   :  { %1496 = vmatmul.mubr.msk.bf16.vlgmr.msra.gmra.mrb[8].mxu0 %vm532_vm5, %v826_v16 }
 0x598   :  { %1506 = vmatpush3.bf16.msra.mxu0 %v1640_v24 }
 0x599   :  { %1507 = vmatprep.subr.bf16.mxu0 %v1641_v56 }
 0x59c   :  { %1508 = vmatpush3.bf16.msra.mxu0 %v1641_v56 }
 0x59d   :  { %1525 = vmatprep.subr.bf16.mxu0 %v1916_v0 }
 0x66a   :  { %v1497_v26 = vpop.f32.mrb[8].mxu0 }
 0x66b   :  { %v899_v28 = vadd.f32 %v1497_v26, %v1404_v25  ;;  %v890_v29 = vpop.f32.mrb[9].mxu0 }
 0x66c   :  { %v891_v32 = vadd.f32 %v1404_v25, %v890_v29  ;;  %v1498_v33 = vpop.f32.mrb[10].mxu0 }
 0x66d   :  { %v907_v39 = vmax.f32 %v899_v28, 0.0  ;;  %v902_v42 = vadd.f32 %v1498_v33, %v1404_v25  ;;  %v893_v44 = vpop.f32.mrb[11].mxu0 }
 0x66e   :  { %v905_v37 = vmax.f32 %v891_v32, 0.0  ;;  %v894_v47 = vadd.f32 %v1404_v25, %v893_v44  ;;  %v1413_v32 = vld [vmem:[#allocation17] ss:$0 sm:$0xff] }
 0x66f   :  { %v925_v48 = vadd.f32 %v916_v46, %v907_v39  ;;  %v908_v49 = vmax.f32 %v902_v42, 0.0 }
 0x670   :  { %v923_v35 = vadd.f32 %v911_v43, %v905_v37  ;;  %v906_v51 = vmax.f32 %v894_v47, 0.0  ;;  %v1644_v43 = vld [vmem:[%s2424_s13 + $0x10] sm:$0xff]  }
 0x671   :  { %v929_v38 = vmax.f32 %v925_v48, 0.0  ;;  %v926_v52 = vadd.f32 %v918_v50, %v908_v49 }
 0x672   :  { %v927_v53 = vmax.f32 %v923_v35, 0.0  ;;  %v924_v54 = vadd.f32 %v913_v36, %v906_v51  ;;  %v1645_v35 = vld [vmem:[%s2424_s13 + $0x18] sm:$0xff]   ;;  %s1919_s13 = smov 32  }
 0x673   :  { %933 = vst [vmem:[#allocation2 + $0x1c] sm:$0xff] %v929_v38  ;;  %v930_v40 = vmax.f32 %v926_v52, 0.0 }
 0x674   :  { %931 = vst [vmem:[#allocation2 + $0x4] sm:$0xff] %v927_v53  ;;  %v928_v55 = vmax.f32 %v924_v54, 0.0 }
 0x675   :  { %934 = vst [vmem:[#allocation2 + $0x24] sm:$0xff] %v930_v40 }
 0x676   :  { %932 = vst [vmem:[#allocation2 + $0xc] sm:$0xff] %v928_v55 }
 0x67a   :  { %v938_v57 = vld [vmem:[#allocation2 + $0x18] sm:$0xff] }
 0x67b   :  { %v935_v58 = vld [vmem:[#allocation2] sm:$0xff]  ;;  %v952_v61 = vrot.slane %v938_v57, 4 }
 0x67c   :  { %v939_v59 = vld [vmem:[#allocation2 + $0x20] sm:$0xff]  ;;  %v940_v60 = vld [vmem:[#allocation2 + $0x28] sm:$0xff]  ;;  %v947_v3 = vrot.slane %v935_v58, 4 }
 0x67d   :  { %v953_v62 = vrot.slane %v939_v59, 4  ;;  %v955_v63 = vrot.slane %v940_v60, 4  ;;  %v936_v1 = vld [vmem:[#allocation2 + $0x8] sm:$0xff]  ;;  %v937_v2 = vld [vmem:[#allocation2 + $0x10] sm:$0xff] }
 0x67e   :  { %v948_v4 = vrot.slane %v936_v1, 4  ;;  %v950_v5 = vrot.slane %v937_v2, 4 }
 0x67f   :  { %v954_v6 = vsel %vm217_vm4, %v952_v61, %v953_v62  ;;  %v956_v7 = vsel %vm217_vm4, %v953_v62, %v955_v63 }
 0x680   :  { %v1616_v8 = vpack.i.bf16 %v956_v7, %v954_v6  ;;  %v949_v12 = vsel %vm217_vm4, %v947_v3, %v948_v4  ;;  %v951_v13 = vsel %vm217_vm4, %v948_v4, %v950_v5  ;;  %v962_v19 = vpack.c.bf16 %v956_v7, %v954_v6 }
 0x681   :  { %v1611_v14 = vpack.i.bf16 %v951_v13, %v949_v12  ;;  %v961_v18 = vpack.c.bf16 %v951_v13, %v949_v12 }
 0x682   :  { %1617 = vrot.lane.b32.xlu1 %v1616_v8, %s1918_s6 }
 0x683   :  { %1612 = vrot.lane.b32.xlu0 %v1611_v14, %s1918_s6  ;;  %1501 = vmatprep.mubr.msk.bf16.mxu1 %vm249_vm3, %v961_v18  ;;  %s1372_s6 = sshll.u32 %s1921_s30, 4  ;;  %s1373_s6 = int_to_ptr.vmem [resolvable:$true] %s1372_s6 }
 0x684   :  { %1502 = vmatmul.mubr.msk.bf16.vlgmr.msra.gmra.mrb[8].mxu1 %vm249_vm3, %v962_v19  ;;  %s1868_s5 = scalar_lea.vmem %s1373_s6, 32  ;;  %p1873_p11 = scmp.lt.s32.totalorder %s1373_s6, %s1373_s6 }
 0x685   :  { %1514 = vmatpush3.bf16.msra.mxu1 %v1642_v30  ;;  %p1869_p10 = scmp.ne.s32.totalorder %s1373_s6, %s1868_s5  ;;  %p1874_p12 = scmp.lt.s32.totalorder %s1868_s5, %s1868_s5 }
 0x686   :  { %1515 = vmatprep.subr.bf16.mxu1 %v1643_v31 }
 0x687   :  { %p1875_p13 = por %p1874_p12, %p1873_p11 }
 0x689   :  { %1516 = vmatpush3.bf16.msra.mxu1 %v1643_v31  ;;  %p1876_p0 = pnand %p1875_p13, %p1869_p10 }
 0x68a   :  { %1517 = vmatprep.subr.bf16.mxu1 %v1644_v43 }
 0x68d   :  { %1518 = vmatpush3.bf16.msra.mxu1 %v1644_v43 }
 0x68e   :  { %1519 = vmatprep.subr.bf16.mxu1 %v1645_v35 }
 0x691   :  { %1520 = vmatpush3.bf16.msra.mxu1 %v1645_v35 }
 0x6f4   :  { %v1618_v9 = vpop.permute.xlu1 %1617 }
 0x6f5   :  { %v1620_v10 = vunpack.i.h.bf16 %v1618_v9  ;;  %v1619_v20 = vunpack.i.l.bf16 %v1618_v9  ;;  %v1613_v11 = vpop.permute.xlu0 %1612  ;;  %v1646_v9 = vld [vmem:[%s2428_s17] sm:$0xff]  }
 0x6f6   :  { %v1615_v21 = vunpack.i.h.bf16 %v1613_v11  ;;  %v1614_v15 = vunpack.i.l.bf16 %v1613_v11  ;;  %v1409_v11 = vld [vmem:[%s2427_s16] ss:$0 sm:$0xff] }
 0x6f7   :  { %v1048_v17 = vsel %vm249_vm3, %v939_v59, %v1620_v10  ;;  %v1047_v22 = vsel %vm249_vm3, %v938_v57, %v1619_v20  ;;  %v1647_v10 = vld [vmem:[%s2428_s17 + $0x8] sm:$0xff]   ;;  %v1418_v20 = vld [vmem:[#allocation18] ss:$0 sm:$0xff] }
 0x6f8   :  { %v1046_v16 = vsel %vm249_vm3, %v936_v1, %v1615_v21  ;;  %v1045_v23 = vsel %vm249_vm3, %v935_v58, %v1614_v15  ;;  %v1050_v25 = vpack.c.bf16 %v1048_v17, %v1047_v22 }
 0x6f9   :  { %v1049_v24 = vpack.c.bf16 %v1046_v16, %v1045_v23 }
 0x6fb   :  { %1509 = vmatprep.mubr.msk.bf16.mxu0 %vm532_vm5, %v1049_v24 }
 0x6fc   :  { %1510 = vmatmul.mubr.msk.bf16.vlgmr.msra.gmra.mrb[12].mxu0 %vm532_vm5, %v1050_v25 }
 0x6fd   :  { %1526 = vmatpush3.bf16.msra.mxu0 %v1646_v9  ;;  %1529 = vmatprep.mubr.msk.bf16.mxu0 %vm1920_vm8, %v1916_v0 }
 0x6fe   :  { %1527 = vmatprep.subr.bf16.mxu0 %v1916_v0 }
 0x701   :  { %1528 = vmatpush3.bf16.msra.mxu0 %v1647_v10 }
 0x757   :  { %v2352_v26 = vpop.f32.mrb[8].mxu1 }
 0x758   :  { %v2354_v27 = vpop.f32.mrb[9].mxu1  ;;  %v1027_v23 = vadd.f32 %v2352_v26, %v1409_v11 }
 0x759   :  { %v2356_v28 = vpop.f32.mrb[10].mxu1  ;;  %v1019_v31 = vadd.f32 %v1409_v11, %v2354_v27 }
 0x75a   :  { %v2358_v29 = vpop.f32.mrb[11].mxu1  ;;  %v1030_v0 = vadd.f32 %v2356_v28, %v1409_v11 }
 0x7cf   :  { %v1511_v33 = vpop.f32.mrb[12].mxu0 }
 0x7d0   :  { %v1123_v34 = vadd.f32 %v1511_v33, %v1413_v32  ;;  %v1114_v39 = vpop.f32.mrb[13].mxu0 }
 0x7d1   :  { %v1115_v41 = vadd.f32 %v1413_v32, %v1114_v39  ;;  %v1512_v42 = vpop.f32.mrb[14].mxu0 }
 0x7d2   :  { %v1131_v44 = vmax.f32 %v1123_v34, 0.0  ;;  %v1126_v45 = vadd.f32 %v1512_v42, %v1413_v32  ;;  %v1117_v46 = vpop.f32.mrb[15].mxu0 }
 0x7d3   :  { %v1129_v37 = vmax.f32 %v1115_v41, 0.0  ;;  %v1118_v47 = vadd.f32 %v1413_v32, %v1117_v46  ;;  %v1022_v41 = vadd.f32 %v1409_v11, %v2358_v29 }
 0x7d4   :  { %1135 = vst [vmem:[#allocation2 + $0x1c] sm:$0xff] %v1131_v44  ;;  %v1132_v48 = vmax.f32 %v1126_v45, 0.0 }
 0x7d5   :  { %1133 = vst [vmem:[#allocation2 + $0x4] sm:$0xff] %v1129_v37  ;;  %v1130_v49 = vmax.f32 %v1118_v47, 0.0 }
 0x7d6   :  { %1136 = vst [vmem:[#allocation2 + $0x24] sm:$0xff] %v1132_v48 }
 0x7d7   :  { %1134 = vst [vmem:[#allocation2 + $0xc] sm:$0xff] %v1130_v49 }
 0x7db   :  { %v1140_v50 = vld [vmem:[#allocation2 + $0x18] sm:$0xff] }
 0x7dc   :  { %v1137_v51 = vld [vmem:[#allocation2] sm:$0xff]  ;;  %v1154_v36 = vrot.slane %v1140_v50, 4 }
 0x7dd   :  { %v1141_v38 = vld [vmem:[#allocation2 + $0x20] sm:$0xff]  ;;  %v1142_v52 = vld [vmem:[#allocation2 + $0x28] sm:$0xff]  ;;  %v1149_v56 = vrot.slane %v1137_v51, 4 }
 0x7de   :  { %v1155_v53 = vrot.slane %v1141_v38, 4  ;;  %v1157_v54 = vrot.slane %v1142_v52, 4  ;;  %v1138_v40 = vld [vmem:[#allocation2 + $0x8] sm:$0xff]  ;;  %v1139_v55 = vld [vmem:[#allocation2 + $0x10] sm:$0xff] }
 0x7df   :  { %v1150_v57 = vrot.slane %v1138_v40, 4  ;;  %v1152_v58 = vrot.slane %v1139_v55, 4 }
 0x7e0   :  { %v1156_v59 = vsel %vm217_vm4, %v1154_v36, %v1155_v53  ;;  %v1158_v60 = vsel %vm217_vm4, %v1155_v53, %v1157_v54 }
 0x7e1   :  { %v1626_v61 = vpack.i.bf16 %v1158_v60, %v1156_v59  ;;  %v1151_v62 = vsel %vm217_vm4, %v1149_v56, %v1150_v57  ;;  %v1153_v63 = vsel %vm217_vm4, %v1150_v57, %v1152_v58 }
 0x7e2   :  { %v1621_v1 = vpack.i.bf16 %v1153_v63, %v1151_v62 }
 0x7e3   :  { %1627 = vrot.lane.b32.xlu1 %v1626_v61, %s1919_s13 }
 0x7e4   :  { %1622 = vrot.lane.b32.xlu0 %v1621_v1, %s1919_s13 }
 0x855   :  { %v1628_v2 = vpop.permute.xlu1 %1627 }
 0x856   :  { %v1630_v3 = vunpack.i.h.bf16 %v1628_v2  ;;  %v1629_v4 = vunpack.i.l.bf16 %v1628_v2  ;;  %v1623_v5 = vpop.permute.xlu0 %1622 }
 0x857   :  { %v1625_v6 = vunpack.i.h.bf16 %v1623_v5  ;;  %v1624_v7 = vunpack.i.l.bf16 %v1623_v5 }
 0x858   :  { %v1174_v8 = vsel %vm532_vm5, %v1141_v38, %v1630_v3  ;;  %v1173_v12 = vsel %vm532_vm5, %v1140_v50, %v1629_v4  ;;  %v1425_v38 = vld [vmem:[%s2429_s18] ss:$0 sm:$0xff] }
 0x859   :  { %v1172_v13 = vsel %vm532_vm5, %v1138_v40, %v1625_v6  ;;  %v1171_v14 = vsel %vm532_vm5, %v1137_v51, %v1624_v7  ;;  %v1176_v19 = vpack.c.bf16 %v1174_v8, %v1173_v12 }
 0x85a   :  { %v1175_v18 = vpack.c.bf16 %v1172_v13, %v1171_v14 }
 0x85c   :  { %1521 = vmatprep.mubr.msk.bf16.mxu1 %vm1216_vm7, %v1175_v18 }
 0x85d   :  { %1522 = vmatmul.mubr.msk.bf16.vlgmr.msra.gmra.mrb[12].mxu1 %vm1216_vm7, %v1176_v19 }
 0x930   :  { %v1523_v21 = vpop.f32.mrb[12].mxu1 }
 0x931   :  { %v1266_v15 = vadd.f32 %v1523_v21, %v1418_v20  ;;  %v1257_v17 = vpop.f32.mrb[13].mxu1 }
 0x932   :  { %v1258_v22 = vadd.f32 %v1418_v20, %v1257_v17  ;;  %v1524_v16 = vpop.f32.mrb[14].mxu1 }
 0x933   :  { %v1274_v24 = vmax.f32 %v1266_v15, 0.0  ;;  %v1269_v25 = vadd.f32 %v1524_v16, %v1418_v20  ;;  %v1260_v30 = vpop.f32.mrb[15].mxu1 }
 0x934   :  { %v1272_v32 = vmax.f32 %v1258_v22, 0.0  ;;  %v1261_v33 = vadd.f32 %v1418_v20, %v1260_v30 }
 0x935   :  { %v1278_v34 = vadd.f32 %v1274_v24, %v1027_v23  ;;  %v1275_v39 = vmax.f32 %v1269_v25, 0.0 }
 0x936   :  { %v1276_v42 = vadd.f32 %v1272_v32, %v1019_v31  ;;  %v1273_v44 = vmax.f32 %v1261_v33, 0.0 }
 0x937   :  { %v1282_v45 = vmax.f32 %v1278_v34, 0.0  ;;  %v1279_v46 = vadd.f32 %v1275_v39, %v1030_v0 }
 0x938   :  { %v1280_v37 = vmax.f32 %v1276_v42, 0.0  ;;  %v1277_v47 = vadd.f32 %v1273_v44, %v1022_v41 }
 0x939   :  { %1286 = vst [vmem:[#allocation2 + $0x1c] sm:$0xff] %v1282_v45  ;;  %v1283_v26 = vmax.f32 %v1279_v46, 0.0 }
 0x93a   :  { %1284 = vst [vmem:[#allocation2 + $0x4] sm:$0xff] %v1280_v37  ;;  %v1281_v48 = vmax.f32 %v1277_v47, 0.0 }
 0x93b   :  { %1287 = vst [vmem:[#allocation2 + $0x24] sm:$0xff] %v1283_v26  ;;  %v1289_v27 = vpack.c.bf16 %v1283_v26, %v1283_v26 }
 0x93c   :  { %1285 = vst [vmem:[#allocation2 + $0xc] sm:$0xff] %v1281_v48  ;;  %v1288_v43 = vpack.c.bf16 %v1281_v48, %v1281_v48 }
 0x93d   :  { %v1304_v49 = vunpack.c.l.b16 %v1289_v27 }
 0x93e   :  { %v1303_v28 = vunpack.c.l.b16 %v1288_v43 }
 0x93f   :  { %v1306_v35 = vrot.slane %v1304_v49, 6 }
 0x940   :  { %v1305_v50 = vrot.slane %v1303_v28, 7 }
 0x942   :  { %v1308_v29 = vsel %vm1307_vm9, %v1306_v35, %v1305_v50 }
 0x943   :  { %v1309_v51 = vpack.c.b16 %v1308_v29, %v1308_v29 }
 0x945   :  { %1530 = vmatmul.mubr.msk.bf16.vlgmr.msra.gmra.mrb[16].mxu0 %vm532_vm5, %v1309_v51 }
 0xa18   :  { %v1359_v52 = vpop.f32.mrb[16].mxu0 }
 0xa19   :  { %v1360_v36 = vadd.f32 %v1425_v38, %v1359_v52  ;;  %v1531_v53 = vpop.f32.mrb[17].mxu0 }
 0xa1a   :  { %v1362_v54 = vpop.f32.mrb[18].mxu0 }
 0xa1b   :  { %1365 = vst [vmem:[#allocation20] sm:$0x3] %v1360_v36  ;;  %v1532_v40 = vpop.f32.mrb[19].mxu0 }
 0xa1c   :  { %1879 = shalt.err (!%p1876_p0)
}
 0xa1d   :  { %s1880_s18 = scalar_lea.hbm %s2430_s19, 32 }
 0xa1e   :  { %p1881_p1 = scmp.ne.s32.totalorder %s2430_s19, %s1880_s18  ;;  %p1884_p2 = scmp.lt.u32.totalorder %s1880_s18, %s2430_s19 }
 0xa20   :  { %p1886_p3 = pnand %p1884_p2, %p1881_p1 }
 0xa22   :  { %1889 = shalt.err (!%p1886_p3)
}
 0xa23   :  { %1375 = dma.vmem_to_hbm [thread:$0]  %s1373_s6, 32, %s2430_s19, [#allocation5]  }
 0xa24   :  { %1902 = dma.done.wait [#allocation5], 32  }
 0xa25   :  { %1903 = vsyncadd [#allocation5], 4294967264 }
 0xa26   :  { %1379 = vsyncpa [#allocation4], 1 }
 0xa27   :  { %1380 = vsyncpa [#allocation7], 1 }
 0xa28   :  { %1381 = vsyncpa [#allocation10], 1 }
 0xa29   :  { %1382 = vsyncpa [#allocation13], 1 }
 0xa2a   :  { %1383 = vsyncpa [#allocation16], 1 }
 0xa2b   :  { %1384 = vsyncpa [#allocation19], 1 }
 0xa2c   :  { %1385 = vsyncpa [#allocation5], 1 }

</bundles_post_ra>
